<compile_context>
chip_gen: v5e
topology: v5e:2x2
jax: 0.10.0
libtpu: 0.0.40
codegen_flags: <defaults>
</compile_context>

<pallas_src>
import jax
import jax.numpy as jnp
import numpy as np
from jax.experimental import pallas as pl
from jax.experimental.pallas import tpu as pltpu


def _make_kernel(batch, seq_len, embed, hidden, num_layers):
    hid2 = hidden // 2
    f32 = jnp.float32
    B, S = batch, seq_len

    def kernel(x_ref, w_fused_ref, b_fused_ref, w_hh_lstm_ref, *rest):
        rnn_refs = rest[:3 * num_layers]
        (w_out_ref, b_out_ref, out_ref, hid_ref,
         lstm_buf, rnn_buf) = rest[3 * num_layers:]

        # ---- fused (inp Linear + LSTM input projection), hoisted out of the loop ----
        # gates_x[b*S + t, :] = x[b, t, :] @ (W_inp @ W_ih) + (b_inp @ W_ih + b_lstm)
        gates_x = (jnp.dot(x_ref[...], w_fused_ref[...],
                           preferred_element_type=f32) + b_fused_ref[...])
        gates_x = gates_x.reshape(B, S, 4 * hid2)              # (B, S, 4*hid2)

        # ---- LSTM(hidden -> hidden//2): only h @ W_hh stays in the serial chain ----
        w_hh = w_hh_lstm_ref[...]                              # (hid2, 4*hid2)
        h = jnp.zeros((B, hid2), f32)
        c = jnp.zeros((B, hid2), f32)
        for t in range(S):                                     # static unroll
            gates = gates_x[:, t, :] + jnp.dot(h, w_hh, preferred_element_type=f32)
            sg = jax.nn.sigmoid(gates)                         # one full-width EUP call
            i = sg[:, 0 * hid2:1 * hid2]
            f = sg[:, 1 * hid2:2 * hid2]
            o = sg[:, 3 * hid2:4 * hid2]
            g = jnp.tanh(gates[:, 2 * hid2:3 * hid2])
            c = f * c + i * g
            h = o * jnp.tanh(c)
            lstm_buf[:, t, :] = h                              # direct VMEM scratch store

        # ---- stacked tanh-RNN, zero initial state -----------------------------------
        layer_flat = lstm_buf[...].reshape(B * S, hid2)
        for l in range(num_layers):
            w_ih_r = rnn_refs[3 * l][...]                      # (in_l, H)
            w_hh_r = rnn_refs[3 * l + 1][...]                  # (H, H)
            b_r = rnn_refs[3 * l + 2][...]                     # (1, H)
            # hoisted input-to-hidden matmul over all timesteps at once
            gates_r = (jnp.dot(layer_flat, w_ih_r, preferred_element_type=f32)
                       + b_r).reshape(B, S, hidden)
            h_r = jnp.zeros((B, hidden), f32)
            for t in range(S):
                h_r = jnp.tanh(gates_r[:, t, :]
                               + jnp.dot(h_r, w_hh_r, preferred_element_type=f32))
                rnn_buf[:, t, :] = h_r
            hid_ref[l, :, :] = h_r                             # h_n for this layer
            layer_flat = rnn_buf[...].reshape(B * S, hidden)   # next layer's input

        # ---- out: Linear(hidden -> embed), flat 2-D store ---------------------------
        y = (jnp.dot(layer_flat, w_out_ref[...], preferred_element_type=f32)
             + b_out_ref[...])                                 # (B*S, E)
        out_ref[...] = y

    return kernel


def description_encoder_forward(x, params, hidden_size, num_layers):
    B, S, E = x.shape
    H = hidden_size
    hid2 = H // 2
    f32 = jnp.float32

    # Wrapper-side (one-time) precompute: fold the input Linear into the LSTM
    # input-to-gate weights; exact up to f32 rounding order.
    w_fused = params['w_inp'] @ params['w_ih_lstm']                      # (E, 4*hid2)
    b_fused = params['b_inp'] @ params['w_ih_lstm'] + params['b_lstm']   # (1, 4*hid2)

    x_flat = x.reshape(B * S, E)                               # free metadata reshape in HBM

    args = [x_flat, w_fused, b_fused, params['w_hh_lstm']]
    for l in range(num_layers):
        args += [params[f'w_ih_rnn{l}'], params[f'w_hh_rnn{l}'], params[f'b_rnn{l}']]
    args += [params['w_out'], params['b_out']]

    kernel = _make_kernel(B, S, E, H, num_layers)
    out_shape = (jax.ShapeDtypeStruct((B * S, E), f32),        # flat output slab
                 jax.ShapeDtypeStruct((num_layers, B, H), f32))
    vmem = pl.BlockSpec(memory_space=pltpu.MemorySpace.VMEM)
    out_flat, hidden = pl.pallas_call(
        kernel,
        out_shape=out_shape,
        in_specs=[vmem for _ in args],
        out_specs=(vmem, vmem),
        scratch_shapes=[pltpu.VMEM((B, S, hid2), f32),         # LSTM per-step outputs
                        pltpu.VMEM((B, S, H), f32)],           # RNN per-step outputs
    )(*args)
    # TODO(synk): for production shapes add a batch grid (parallel) + batch-tiled
    # BlockSpecs and a vmem_limit budget; at B=2 a grid would only slow down v5e/v6e.
    return out_flat.reshape(B, S, E), hidden


def init_params(key, embed, hidden, num_layers):
    """Deterministic synthetic params; mirrors PyTorch default U(-1/sqrt(fan), 1/sqrt(fan))."""
    hid2 = hidden // 2
    keys = jax.random.split(key, 8 + 4 * num_layers)

    def unif(k, shape, fan):
        bound = 1.0 / np.sqrt(fan)
        return jax.random.uniform(k, shape, jnp.float32, -bound, bound)

    p = {}
    p['w_inp'] = unif(keys[0], (embed, hidden), embed)             # Linear.weight.T
    p['b_inp'] = unif(keys[1], (1, hidden), embed)
    p['w_ih_lstm'] = unif(keys[2], (hidden, 4 * hid2), hid2)       # weight_ih_l0.T
    p['w_hh_lstm'] = unif(keys[3], (hid2, 4 * hid2), hid2)         # weight_hh_l0.T
    p['b_lstm'] = (unif(keys[4], (1, 4 * hid2), hid2)
                   + unif(keys[5], (1, 4 * hid2), hid2))           # bias_ih + bias_hh
    ki = 6
    in_l = hid2
    for l in range(num_layers):
        p[f'w_ih_rnn{l}'] = unif(keys[ki], (in_l, hidden), hidden); ki += 1
        p[f'w_hh_rnn{l}'] = unif(keys[ki], (hidden, hidden), hidden); ki += 1
        p[f'b_rnn{l}'] = (unif(keys[ki], (1, hidden), hidden)
                          + unif(keys[ki + 1], (1, hidden), hidden)); ki += 2
        in_l = hidden
    p['w_out'] = unif(keys[ki], (hidden, embed), hidden); ki += 1
    p['b_out'] = unif(keys[ki], (1, embed), hidden)
    return p


def reference_forward(x, params, hidden_size, num_layers):
    """Pure-JAX reference with the original (unfused) math, matching PyTorch semantics."""
    B, S, E = x.shape
    H = hidden_size
    hid2 = H // 2
    h_in = jnp.einsum('bse,eh->bsh', x, params['w_inp']) + params['b_inp']
    h = jnp.zeros((B, hid2)); c = jnp.zeros((B, hid2))
    outs = []
    for t in range(S):
        gates = h_in[:, t, :] @ params['w_ih_lstm'] + h @ params['w_hh_lstm'] + params['b_lstm']
        i = jax.nn.sigmoid(gates[:, 0 * hid2:1 * hid2])
        f = jax.nn.sigmoid(gates[:, 1 * hid2:2 * hid2])
        g = jnp.tanh(gates[:, 2 * hid2:3 * hid2])
        o = jax.nn.sigmoid(gates[:, 3 * hid2:4 * hid2])
        c = f * c + i * g
        h = o * jnp.tanh(c)
        outs.append(h)
    layer_in = jnp.stack(outs, axis=1)
    h_n = []
    for l in range(num_layers):
        h_r = jnp.zeros((B, H))
        outs = []
        for t in range(S):
            h_r = jnp.tanh(layer_in[:, t, :] @ params[f'w_ih_rnn{l}']
                           + h_r @ params[f'w_hh_rnn{l}'] + params[f'b_rnn{l}'])
            outs.append(h_r)
        layer_in = jnp.stack(outs, axis=1)
        h_n.append(h_r)
    out = jnp.einsum('bsh,he->bse', layer_in, params['w_out']) + params['b_out']
    return out, jnp.stack(h_n, axis=0)


if __name__ == "__main__":
    embed_size, hidden_size, seq_len, num_layers, batch = 32, 32, 8, 2, 2
    key = jax.random.PRNGKey(0)
    pkey, xkey = jax.random.split(key)
    params = init_params(pkey, embed_size, hidden_size, num_layers)
    x = jax.random.normal(xkey, (batch, seq_len, embed_size), jnp.float32)

    out, hidden = description_encoder_forward(x, params, hidden_size, num_layers)
    jax.block_until_ready((out, hidden))

    ref_out, ref_hidden = reference_forward(x, params, hidden_size, num_layers)
    # Tolerance slightly looser than before: the wrapper-side W_inp @ W_ih_lstm fusion
    # changes f32 rounding order (mathematically identical).
    np.testing.assert_allclose(np.asarray(out), np.asarray(ref_out), rtol=1e-4, atol=1e-5)
    np.testing.assert_allclose(np.asarray(hidden), np.asarray(ref_hidden), rtol=1e-4, atol=1e-5)

    assert out.shape == (batch, seq_len, embed_size)
    assert hidden.shape == (num_layers, batch, hidden_size)
    print("KERNEL_OK")
</pallas_src>

<mosaic_0001>
module attributes {stable_mosaic.version = 11 : i64} {
  func.func @kernel(%arg0: memref<16x32xf32, #tpu.memory_space<vmem>>, %arg1: memref<32x64xf32, #tpu.memory_space<vmem>>, %arg2: memref<1x64xf32, #tpu.memory_space<vmem>>, %arg3: memref<16x64xf32, #tpu.memory_space<vmem>>, %arg4: memref<16x32xf32, #tpu.memory_space<vmem>>, %arg5: memref<32x32xf32, #tpu.memory_space<vmem>>, %arg6: memref<1x32xf32, #tpu.memory_space<vmem>>, %arg7: memref<32x32xf32, #tpu.memory_space<vmem>>, %arg8: memref<32x32xf32, #tpu.memory_space<vmem>>, %arg9: memref<1x32xf32, #tpu.memory_space<vmem>>, %arg10: memref<32x32xf32, #tpu.memory_space<vmem>>, %arg11: memref<1x32xf32, #tpu.memory_space<vmem>>, %arg12: memref<16x32xf32, #tpu.memory_space<vmem>>, %arg13: memref<2x2x32xf32, #tpu.memory_space<vmem>>, %arg14: memref<2x8x16xf32, #tpu.memory_space<vmem>>, %arg15: memref<2x8x32xf32, #tpu.memory_space<vmem>>) attributes {dimension_semantics = [], scalar_prefetch = 0 : i64, scratch_operands = 2 : i64, tpu.core_type = #tpu.core_type<tc>} {
    %c0 = arith.constant 0 : index
    %c0_0 = arith.constant 0 : index
    %0 = vector.load %arg0[%c0, %c0_0] : memref<16x32xf32, #tpu.memory_space<vmem>>, vector<16x32xf32>
    %c0_1 = arith.constant 0 : index
    %c0_2 = arith.constant 0 : index
    %1 = vector.load %arg1[%c0_1, %c0_2] : memref<32x64xf32, #tpu.memory_space<vmem>>, vector<32x64xf32>
    %cst = arith.constant dense<0.000000e+00> : vector<16x64xf32>
    %2 = tpu.matmul %0, %1, %cst {dimension_numbers = #tpu.dot_dimension_numbers<[1], [0], [0], [1], [0, 0, 1, 1], [], []>} : vector<16x32xf32>, vector<32x64xf32>, vector<16x64xf32> -> vector<16x64xf32>
    %c0_3 = arith.constant 0 : index
    %c0_4 = arith.constant 0 : index
    %3 = vector.load %arg2[%c0_3, %c0_4] : memref<1x64xf32, #tpu.memory_space<vmem>>, vector<1x64xf32>
    %4 = vector.broadcast %3 : vector<1x64xf32> to vector<16x64xf32>
    %5 = arith.addf %2, %4 : vector<16x64xf32>
    %6 = vector.shape_cast %5 : vector<16x64xf32> to vector<2x8x64xf32>
    %c0_5 = arith.constant 0 : index
    %c0_6 = arith.constant 0 : index
    %7 = vector.load %arg3[%c0_5, %c0_6] : memref<16x64xf32, #tpu.memory_space<vmem>>, vector<16x64xf32>
    %cst_7 = arith.constant 0.000000e+00 : f32
    %8 = vector.broadcast %cst_7 : f32 to vector<2x16xf32>
    %cst_8 = arith.constant 0.000000e+00 : f32
    %9 = vector.broadcast %cst_8 : f32 to vector<2x16xf32>
    %10 = vector.extract_strided_slice %6 {offsets = [0, 0, 0], sizes = [2, 1, 64], strides = [1, 1, 1]} : vector<2x8x64xf32> to vector<2x1x64xf32>
    %11 = vector.shape_cast %10 : vector<2x1x64xf32> to vector<2x64xf32>
    %cst_9 = arith.constant dense<0.000000e+00> : vector<2x64xf32>
    %12 = tpu.matmul %8, %7, %cst_9 {dimension_numbers = #tpu.dot_dimension_numbers<[1], [0], [0], [1], [0, 0, 1, 1], [], []>} : vector<2x16xf32>, vector<16x64xf32>, vector<2x64xf32> -> vector<2x64xf32>
    %13 = arith.addf %11, %12 : vector<2x64xf32>
    %14 = arith.negf %13 : vector<2x64xf32>
    %15 = math.exp %14 : vector<2x64xf32>
    %cst_10 = arith.constant 1.000000e+00 : f32
    %16 = vector.broadcast %cst_10 : f32 to vector<2x64xf32>
    %17 = arith.addf %16, %15 : vector<2x64xf32>
    %18 = arith.divf %16, %17 : vector<2x64xf32>
    %19 = vector.extract_strided_slice %18 {offsets = [0, 0], sizes = [2, 16], strides = [1, 1]} : vector<2x64xf32> to vector<2x16xf32>
    %20 = vector.extract_strided_slice %18 {offsets = [0, 16], sizes = [2, 16], strides = [1, 1]} : vector<2x64xf32> to vector<2x16xf32>
    %21 = vector.extract_strided_slice %18 {offsets = [0, 48], sizes = [2, 16], strides = [1, 1]} : vector<2x64xf32> to vector<2x16xf32>
    %22 = vector.extract_strided_slice %13 {offsets = [0, 32], sizes = [2, 16], strides = [1, 1]} : vector<2x64xf32> to vector<2x16xf32>
    %23 = math.tanh %22 : vector<2x16xf32>
    %24 = arith.mulf %20, %9 : vector<2x16xf32>
    %25 = arith.mulf %19, %23 : vector<2x16xf32>
    %26 = arith.addf %24, %25 : vector<2x16xf32>
    %27 = math.tanh %26 : vector<2x16xf32>
    %28 = arith.mulf %21, %27 : vector<2x16xf32>
    %c0_11 = arith.constant 0 : index
    %c0_12 = arith.constant 0 : index
    %c0_13 = arith.constant 0 : index
    %29 = vector.load %arg14[%c0_11, %c0_12, %c0_13] : memref<2x8x16xf32, #tpu.memory_space<vmem>>, vector<2x1x16xf32>
    %30 = vector.shape_cast %29 : vector<2x1x16xf32> to vector<2x16xf32>
    %31 = vector.shape_cast %28 : vector<2x16xf32> to vector<2x1x16xf32>
    tpu.vector_store %arg14[%c0_11, %c0_12, %c0_13], %31 {strides = array<i32>} : memref<2x8x16xf32, #tpu.memory_space<vmem>>, vector<2x1x16xf32>,
    %32 = vector.extract_strided_slice %6 {offsets = [0, 1, 0], sizes = [2, 1, 64], strides = [1, 1, 1]} : vector<2x8x64xf32> to vector<2x1x64xf32>
    %33 = vector.shape_cast %32 : vector<2x1x64xf32> to vector<2x64xf32>
    %cst_14 = arith.constant dense<0.000000e+00> : vector<2x64xf32>
    %34 = tpu.matmul %28, %7, %cst_14 {dimension_numbers = #tpu.dot_dimension_numbers<[1], [0], [0], [1], [0, 0, 1, 1], [], []>} : vector<2x16xf32>, vector<16x64xf32>, vector<2x64xf32> -> vector<2x64xf32>
    %35 = arith.addf %33, %34 : vector<2x64xf32>
    %36 = arith.negf %35 : vector<2x64xf32>
    %37 = math.exp %36 : vector<2x64xf32>
    %cst_15 = arith.constant 1.000000e+00 : f32
    %38 = vector.broadcast %cst_15 : f32 to vector<2x64xf32>
    %39 = arith.addf %38, %37 : vector<2x64xf32>
    %40 = arith.divf %38, %39 : vector<2x64xf32>
    %41 = vector.extract_strided_slice %40 {offsets = [0, 0], sizes = [2, 16], strides = [1, 1]} : vector<2x64xf32> to vector<2x16xf32>
    %42 = vector.extract_strided_slice %40 {offsets = [0, 16], sizes = [2, 16], strides = [1, 1]} : vector<2x64xf32> to vector<2x16xf32>
    %43 = vector.extract_strided_slice %40 {offsets = [0, 48], sizes = [2, 16], strides = [1, 1]} : vector<2x64xf32> to vector<2x16xf32>
    %44 = vector.extract_strided_slice %35 {offsets = [0, 32], sizes = [2, 16], strides = [1, 1]} : vector<2x64xf32> to vector<2x16xf32>
    %45 = math.tanh %44 : vector<2x16xf32>
    %46 = arith.mulf %42, %26 : vector<2x16xf32>
    %47 = arith.mulf %41, %45 : vector<2x16xf32>
    %48 = arith.addf %46, %47 : vector<2x16xf32>
    %49 = math.tanh %48 : vector<2x16xf32>
    %50 = arith.mulf %43, %49 : vector<2x16xf32>
    %c0_16 = arith.constant 0 : index
    %c1 = arith.constant 1 : index
    %c0_17 = arith.constant 0 : index
    %51 = vector.load %arg14[%c0_16, %c1, %c0_17] : memref<2x8x16xf32, #tpu.memory_space<vmem>>, vector<2x1x16xf32>
    %52 = vector.shape_cast %51 : vector<2x1x16xf32> to vector<2x16xf32>
    %53 = vector.shape_cast %50 : vector<2x16xf32> to vector<2x1x16xf32>
    tpu.vector_store %arg14[%c0_16, %c1, %c0_17], %53 {strides = array<i32>} : memref<2x8x16xf32, #tpu.memory_space<vmem>>, vector<2x1x16xf32>,
    %54 = vector.extract_strided_slice %6 {offsets = [0, 2, 0], sizes = [2, 1, 64], strides = [1, 1, 1]} : vector<2x8x64xf32> to vector<2x1x64xf32>
    %55 = vector.shape_cast %54 : vector<2x1x64xf32> to vector<2x64xf32>
    %cst_18 = arith.constant dense<0.000000e+00> : vector<2x64xf32>
    %56 = tpu.matmul %50, %7, %cst_18 {dimension_numbers = #tpu.dot_dimension_numbers<[1], [0], [0], [1], [0, 0, 1, 1], [], []>} : vector<2x16xf32>, vector<16x64xf32>, vector<2x64xf32> -> vector<2x64xf32>
    %57 = arith.addf %55, %56 : vector<2x64xf32>
    %58 = arith.negf %57 : vector<2x64xf32>
    %59 = math.exp %58 : vector<2x64xf32>
    %cst_19 = arith.constant 1.000000e+00 : f32
    %60 = vector.broadcast %cst_19 : f32 to vector<2x64xf32>
    %61 = arith.addf %60, %59 : vector<2x64xf32>
    %62 = arith.divf %60, %61 : vector<2x64xf32>
    %63 = vector.extract_strided_slice %62 {offsets = [0, 0], sizes = [2, 16], strides = [1, 1]} : vector<2x64xf32> to vector<2x16xf32>
    %64 = vector.extract_strided_slice %62 {offsets = [0, 16], sizes = [2, 16], strides = [1, 1]} : vector<2x64xf32> to vector<2x16xf32>
    %65 = vector.extract_strided_slice %62 {offsets = [0, 48], sizes = [2, 16], strides = [1, 1]} : vector<2x64xf32> to vector<2x16xf32>
    %66 = vector.extract_strided_slice %57 {offsets = [0, 32], sizes = [2, 16], strides = [1, 1]} : vector<2x64xf32> to vector<2x16xf32>
    %67 = math.tanh %66 : vector<2x16xf32>
    %68 = arith.mulf %64, %48 : vector<2x16xf32>
    %69 = arith.mulf %63, %67 : vector<2x16xf32>
    %70 = arith.addf %68, %69 : vector<2x16xf32>
    %71 = math.tanh %70 : vector<2x16xf32>
    %72 = arith.mulf %65, %71 : vector<2x16xf32>
    %c0_20 = arith.constant 0 : index
    %c2 = arith.constant 2 : index
    %c0_21 = arith.constant 0 : index
    %73 = vector.load %arg14[%c0_20, %c2, %c0_21] : memref<2x8x16xf32, #tpu.memory_space<vmem>>, vector<2x1x16xf32>
    %74 = vector.shape_cast %73 : vector<2x1x16xf32> to vector<2x16xf32>
    %75 = vector.shape_cast %72 : vector<2x16xf32> to vector<2x1x16xf32>
    tpu.vector_store %arg14[%c0_20, %c2, %c0_21], %75 {strides = array<i32>} : memref<2x8x16xf32, #tpu.memory_space<vmem>>, vector<2x1x16xf32>,
    %76 = vector.extract_strided_slice %6 {offsets = [0, 3, 0], sizes = [2, 1, 64], strides = [1, 1, 1]} : vector<2x8x64xf32> to vector<2x1x64xf32>
    %77 = vector.shape_cast %76 : vector<2x1x64xf32> to vector<2x64xf32>
    %cst_22 = arith.constant dense<0.000000e+00> : vector<2x64xf32>
    %78 = tpu.matmul %72, %7, %cst_22 {dimension_numbers = #tpu.dot_dimension_numbers<[1], [0], [0], [1], [0, 0, 1, 1], [], []>} : vector<2x16xf32>, vector<16x64xf32>, vector<2x64xf32> -> vector<2x64xf32>
    %79 = arith.addf %77, %78 : vector<2x64xf32>
    %80 = arith.negf %79 : vector<2x64xf32>
    %81 = math.exp %80 : vector<2x64xf32>
    %cst_23 = arith.constant 1.000000e+00 : f32
    %82 = vector.broadcast %cst_23 : f32 to vector<2x64xf32>
    %83 = arith.addf %82, %81 : vector<2x64xf32>
    %84 = arith.divf %82, %83 : vector<2x64xf32>
    %85 = vector.extract_strided_slice %84 {offsets = [0, 0], sizes = [2, 16], strides = [1, 1]} : vector<2x64xf32> to vector<2x16xf32>
    %86 = vector.extract_strided_slice %84 {offsets = [0, 16], sizes = [2, 16], strides = [1, 1]} : vector<2x64xf32> to vector<2x16xf32>
    %87 = vector.extract_strided_slice %84 {offsets = [0, 48], sizes = [2, 16], strides = [1, 1]} : vector<2x64xf32> to vector<2x16xf32>
    %88 = vector.extract_strided_slice %79 {offsets = [0, 32], sizes = [2, 16], strides = [1, 1]} : vector<2x64xf32> to vector<2x16xf32>
    %89 = math.tanh %88 : vector<2x16xf32>
    %90 = arith.mulf %86, %70 : vector<2x16xf32>
    %91 = arith.mulf %85, %89 : vector<2x16xf32>
    %92 = arith.addf %90, %91 : vector<2x16xf32>
    %93 = math.tanh %92 : vector<2x16xf32>
    %94 = arith.mulf %87, %93 : vector<2x16xf32>
    %c0_24 = arith.constant 0 : index
    %c3 = arith.constant 3 : index
    %c0_25 = arith.constant 0 : index
    %95 = vector.load %arg14[%c0_24, %c3, %c0_25] : memref<2x8x16xf32, #tpu.memory_space<vmem>>, vector<2x1x16xf32>
    %96 = vector.shape_cast %95 : vector<2x1x16xf32> to vector<2x16xf32>
    %97 = vector.shape_cast %94 : vector<2x16xf32> to vector<2x1x16xf32>
    tpu.vector_store %arg14[%c0_24, %c3, %c0_25], %97 {strides = array<i32>} : memref<2x8x16xf32, #tpu.memory_space<vmem>>, vector<2x1x16xf32>,
    %98 = vector.extract_strided_slice %6 {offsets = [0, 4, 0], sizes = [2, 1, 64], strides = [1, 1, 1]} : vector<2x8x64xf32> to vector<2x1x64xf32>
    %99 = vector.shape_cast %98 : vector<2x1x64xf32> to vector<2x64xf32>
    %cst_26 = arith.constant dense<0.000000e+00> : vector<2x64xf32>
    %100 = tpu.matmul %94, %7, %cst_26 {dimension_numbers = #tpu.dot_dimension_numbers<[1], [0], [0], [1], [0, 0, 1, 1], [], []>} : vector<2x16xf32>, vector<16x64xf32>, vector<2x64xf32> -> vector<2x64xf32>
    %101 = arith.addf %99, %100 : vector<2x64xf32>
    %102 = arith.negf %101 : vector<2x64xf32>
    %103 = math.exp %102 : vector<2x64xf32>
    %cst_27 = arith.constant 1.000000e+00 : f32
    %104 = vector.broadcast %cst_27 : f32 to vector<2x64xf32>
    %105 = arith.addf %104, %103 : vector<2x64xf32>
    %106 = arith.divf %104, %105 : vector<2x64xf32>
    %107 = vector.extract_strided_slice %106 {offsets = [0, 0], sizes = [2, 16], strides = [1, 1]} : vector<2x64xf32> to vector<2x16xf32>
    %108 = vector.extract_strided_slice %106 {offsets = [0, 16], sizes = [2, 16], strides = [1, 1]} : vector<2x64xf32> to vector<2x16xf32>
    %109 = vector.extract_strided_slice %106 {offsets = [0, 48], sizes = [2, 16], strides = [1, 1]} : vector<2x64xf32> to vector<2x16xf32>
    %110 = vector.extract_strided_slice %101 {offsets = [0, 32], sizes = [2, 16], strides = [1, 1]} : vector<2x64xf32> to vector<2x16xf32>
    %111 = math.tanh %110 : vector<2x16xf32>
    %112 = arith.mulf %108, %92 : vector<2x16xf32>
    %113 = arith.mulf %107, %111 : vector<2x16xf32>
    %114 = arith.addf %112, %113 : vector<2x16xf32>
    %115 = math.tanh %114 : vector<2x16xf32>
    %116 = arith.mulf %109, %115 : vector<2x16xf32>
    %c0_28 = arith.constant 0 : index
    %c4 = arith.constant 4 : index
    %c0_29 = arith.constant 0 : index
    %117 = vector.load %arg14[%c0_28, %c4, %c0_29] : memref<2x8x16xf32, #tpu.memory_space<vmem>>, vector<2x1x16xf32>
    %118 = vector.shape_cast %117 : vector<2x1x16xf32> to vector<2x16xf32>
    %119 = vector.shape_cast %116 : vector<2x16xf32> to vector<2x1x16xf32>
    tpu.vector_store %arg14[%c0_28, %c4, %c0_29], %119 {strides = array<i32>} : memref<2x8x16xf32, #tpu.memory_space<vmem>>, vector<2x1x16xf32>,
    %120 = vector.extract_strided_slice %6 {offsets = [0, 5, 0], sizes = [2, 1, 64], strides = [1, 1, 1]} : vector<2x8x64xf32> to vector<2x1x64xf32>
    %121 = vector.shape_cast %120 : vector<2x1x64xf32> to vector<2x64xf32>
    %cst_30 = arith.constant dense<0.000000e+00> : vector<2x64xf32>
    %122 = tpu.matmul %116, %7, %cst_30 {dimension_numbers = #tpu.dot_dimension_numbers<[1], [0], [0], [1], [0, 0, 1, 1], [], []>} : vector<2x16xf32>, vector<16x64xf32>, vector<2x64xf32> -> vector<2x64xf32>
    %123 = arith.addf %121, %122 : vector<2x64xf32>
    %124 = arith.negf %123 : vector<2x64xf32>
    %125 = math.exp %124 : vector<2x64xf32>
    %cst_31 = arith.constant 1.000000e+00 : f32
    %126 = vector.broadcast %cst_31 : f32 to vector<2x64xf32>
    %127 = arith.addf %126, %125 : vector<2x64xf32>
    %128 = arith.divf %126, %127 : vector<2x64xf32>
    %129 = vector.extract_strided_slice %128 {offsets = [0, 0], sizes = [2, 16], strides = [1, 1]} : vector<2x64xf32> to vector<2x16xf32>
    %130 = vector.extract_strided_slice %128 {offsets = [0, 16], sizes = [2, 16], strides = [1, 1]} : vector<2x64xf32> to vector<2x16xf32>
    %131 = vector.extract_strided_slice %128 {offsets = [0, 48], sizes = [2, 16], strides = [1, 1]} : vector<2x64xf32> to vector<2x16xf32>
    %132 = vector.extract_strided_slice %123 {offsets = [0, 32], sizes = [2, 16], strides = [1, 1]} : vector<2x64xf32> to vector<2x16xf32>
    %133 = math.tanh %132 : vector<2x16xf32>
    %134 = arith.mulf %130, %114 : vector<2x16xf32>
    %135 = arith.mulf %129, %133 : vector<2x16xf32>
    %136 = arith.addf %134, %135 : vector<2x16xf32>
    %137 = math.tanh %136 : vector<2x16xf32>
    %138 = arith.mulf %131, %137 : vector<2x16xf32>
    %c0_32 = arith.constant 0 : index
    %c5 = arith.constant 5 : index
    %c0_33 = arith.constant 0 : index
    %139 = vector.load %arg14[%c0_32, %c5, %c0_33] : memref<2x8x16xf32, #tpu.memory_space<vmem>>, vector<2x1x16xf32>
    %140 = vector.shape_cast %139 : vector<2x1x16xf32> to vector<2x16xf32>
    %141 = vector.shape_cast %138 : vector<2x16xf32> to vector<2x1x16xf32>
    tpu.vector_store %arg14[%c0_32, %c5, %c0_33], %141 {strides = array<i32>} : memref<2x8x16xf32, #tpu.memory_space<vmem>>, vector<2x1x16xf32>,
    %142 = vector.extract_strided_slice %6 {offsets = [0, 6, 0], sizes = [2, 1, 64], strides = [1, 1, 1]} : vector<2x8x64xf32> to vector<2x1x64xf32>
    %143 = vector.shape_cast %142 : vector<2x1x64xf32> to vector<2x64xf32>
    %cst_34 = arith.constant dense<0.000000e+00> : vector<2x64xf32>
    %144 = tpu.matmul %138, %7, %cst_34 {dimension_numbers = #tpu.dot_dimension_numbers<[1], [0], [0], [1], [0, 0, 1, 1], [], []>} : vector<2x16xf32>, vector<16x64xf32>, vector<2x64xf32> -> vector<2x64xf32>
    %145 = arith.addf %143, %144 : vector<2x64xf32>
    %146 = arith.negf %145 : vector<2x64xf32>
    %147 = math.exp %146 : vector<2x64xf32>
    %cst_35 = arith.constant 1.000000e+00 : f32
    %148 = vector.broadcast %cst_35 : f32 to vector<2x64xf32>
    %149 = arith.addf %148, %147 : vector<2x64xf32>
    %150 = arith.divf %148, %149 : vector<2x64xf32>
    %151 = vector.extract_strided_slice %150 {offsets = [0, 0], sizes = [2, 16], strides = [1, 1]} : vector<2x64xf32> to vector<2x16xf32>
    %152 = vector.extract_strided_slice %150 {offsets = [0, 16], sizes = [2, 16], strides = [1, 1]} : vector<2x64xf32> to vector<2x16xf32>
    %153 = vector.extract_strided_slice %150 {offsets = [0, 48], sizes = [2, 16], strides = [1, 1]} : vector<2x64xf32> to vector<2x16xf32>
    %154 = vector.extract_strided_slice %145 {offsets = [0, 32], sizes = [2, 16], strides = [1, 1]} : vector<2x64xf32> to vector<2x16xf32>
    %155 = math.tanh %154 : vector<2x16xf32>
    %156 = arith.mulf %152, %136 : vector<2x16xf32>
    %157 = arith.mulf %151, %155 : vector<2x16xf32>
    %158 = arith.addf %156, %157 : vector<2x16xf32>
    %159 = math.tanh %158 : vector<2x16xf32>
    %160 = arith.mulf %153, %159 : vector<2x16xf32>
    %c0_36 = arith.constant 0 : index
    %c6 = arith.constant 6 : index
    %c0_37 = arith.constant 0 : index
    %161 = vector.load %arg14[%c0_36, %c6, %c0_37] : memref<2x8x16xf32, #tpu.memory_space<vmem>>, vector<2x1x16xf32>
    %162 = vector.shape_cast %161 : vector<2x1x16xf32> to vector<2x16xf32>
    %163 = vector.shape_cast %160 : vector<2x16xf32> to vector<2x1x16xf32>
    tpu.vector_store %arg14[%c0_36, %c6, %c0_37], %163 {strides = array<i32>} : memref<2x8x16xf32, #tpu.memory_space<vmem>>, vector<2x1x16xf32>,
    %164 = vector.extract_strided_slice %6 {offsets = [0, 7, 0], sizes = [2, 1, 64], strides = [1, 1, 1]} : vector<2x8x64xf32> to vector<2x1x64xf32>
    %165 = vector.shape_cast %164 : vector<2x1x64xf32> to vector<2x64xf32>
    %cst_38 = arith.constant dense<0.000000e+00> : vector<2x64xf32>
    %166 = tpu.matmul %160, %7, %cst_38 {dimension_numbers = #tpu.dot_dimension_numbers<[1], [0], [0], [1], [0, 0, 1, 1], [], []>} : vector<2x16xf32>, vector<16x64xf32>, vector<2x64xf32> -> vector<2x64xf32>
    %167 = arith.addf %165, %166 : vector<2x64xf32>
    %168 = arith.negf %167 : vector<2x64xf32>
    %169 = math.exp %168 : vector<2x64xf32>
    %cst_39 = arith.constant 1.000000e+00 : f32
    %170 = vector.broadcast %cst_39 : f32 to vector<2x64xf32>
    %171 = arith.addf %170, %169 : vector<2x64xf32>
    %172 = arith.divf %170, %171 : vector<2x64xf32>
    %173 = vector.extract_strided_slice %172 {offsets = [0, 0], sizes = [2, 16], strides = [1, 1]} : vector<2x64xf32> to vector<2x16xf32>
    %174 = vector.extract_strided_slice %172 {offsets = [0, 16], sizes = [2, 16], strides = [1, 1]} : vector<2x64xf32> to vector<2x16xf32>
    %175 = vector.extract_strided_slice %172 {offsets = [0, 48], sizes = [2, 16], strides = [1, 1]} : vector<2x64xf32> to vector<2x16xf32>
    %176 = vector.extract_strided_slice %167 {offsets = [0, 32], sizes = [2, 16], strides = [1, 1]} : vector<2x64xf32> to vector<2x16xf32>
    %177 = math.tanh %176 : vector<2x16xf32>
    %178 = arith.mulf %174, %158 : vector<2x16xf32>
    %179 = arith.mulf %173, %177 : vector<2x16xf32>
    %180 = arith.addf %178, %179 : vector<2x16xf32>
    %181 = math.tanh %180 : vector<2x16xf32>
    %182 = arith.mulf %175, %181 : vector<2x16xf32>
    %c0_40 = arith.constant 0 : index
    %c7 = arith.constant 7 : index
    %c0_41 = arith.constant 0 : index
    %183 = vector.load %arg14[%c0_40, %c7, %c0_41] : memref<2x8x16xf32, #tpu.memory_space<vmem>>, vector<2x1x16xf32>
    %184 = vector.shape_cast %183 : vector<2x1x16xf32> to vector<2x16xf32>
    %185 = vector.shape_cast %182 : vector<2x16xf32> to vector<2x1x16xf32>
    tpu.vector_store %arg14[%c0_40, %c7, %c0_41], %185 {strides = array<i32>} : memref<2x8x16xf32, #tpu.memory_space<vmem>>, vector<2x1x16xf32>,
    %c0_42 = arith.constant 0 : index
    %c0_43 = arith.constant 0 : index
    %c0_44 = arith.constant 0 : index
    %186 = vector.load %arg14[%c0_42, %c0_43, %c0_44] : memref<2x8x16xf32, #tpu.memory_space<vmem>>, vector<2x8x16xf32>
    %187 = vector.shape_cast %186 : vector<2x8x16xf32> to vector<16x16xf32>
    %c0_45 = arith.constant 0 : index
    %c0_46 = arith.constant 0 : index
    %188 = vector.load %arg4[%c0_45, %c0_46] : memref<16x32xf32, #tpu.memory_space<vmem>>, vector<16x32xf32>
    %c0_47 = arith.constant 0 : index
    %c0_48 = arith.constant 0 : index
    %189 = vector.load %arg5[%c0_47, %c0_48] : memref<32x32xf32, #tpu.memory_space<vmem>>, vector<32x32xf32>
    %c0_49 = arith.constant 0 : index
    %c0_50 = arith.constant 0 : index
    %190 = vector.load %arg6[%c0_49, %c0_50] : memref<1x32xf32, #tpu.memory_space<vmem>>, vector<1x32xf32>
    %cst_51 = arith.constant dense<0.000000e+00> : vector<16x32xf32>
    %191 = tpu.matmul %187, %188, %cst_51 {dimension_numbers = #tpu.dot_dimension_numbers<[1], [0], [0], [1], [0, 0, 1, 1], [], []>} : vector<16x16xf32>, vector<16x32xf32>, vector<16x32xf32> -> vector<16x32xf32>
    %192 = vector.broadcast %190 : vector<1x32xf32> to vector<16x32xf32>
    %193 = arith.addf %191, %192 : vector<16x32xf32>
    %194 = vector.shape_cast %193 : vector<16x32xf32> to vector<2x8x32xf32>
    %cst_52 = arith.constant 0.000000e+00 : f32
    %195 = vector.broadcast %cst_52 : f32 to vector<2x32xf32>
    %196 = vector.extract_strided_slice %194 {offsets = [0, 0, 0], sizes = [2, 1, 32], strides = [1, 1, 1]} : vector<2x8x32xf32> to vector<2x1x32xf32>
    %197 = vector.shape_cast %196 : vector<2x1x32xf32> to vector<2x32xf32>
    %cst_53 = arith.constant dense<0.000000e+00> : vector<2x32xf32>
    %198 = tpu.matmul %195, %189, %cst_53 {dimension_numbers = #tpu.dot_dimension_numbers<[1], [0], [0], [1], [0, 0, 1, 1], [], []>} : vector<2x32xf32>, vector<32x32xf32>, vector<2x32xf32> -> vector<2x32xf32>
    %199 = arith.addf %197, %198 : vector<2x32xf32>
    %200 = math.tanh %199 : vector<2x32xf32>
    %c0_54 = arith.constant 0 : index
    %c0_55 = arith.constant 0 : index
    %c0_56 = arith.constant 0 : index
    %201 = vector.load %arg15[%c0_54, %c0_55, %c0_56] : memref<2x8x32xf32, #tpu.memory_space<vmem>>, vector<2x1x32xf32>
    %202 = vector.shape_cast %201 : vector<2x1x32xf32> to vector<2x32xf32>
    %203 = vector.shape_cast %200 : vector<2x32xf32> to vector<2x1x32xf32>
    tpu.vector_store %arg15[%c0_54, %c0_55, %c0_56], %203 {strides = array<i32>} : memref<2x8x32xf32, #tpu.memory_space<vmem>>, vector<2x1x32xf32>,
    %204 = vector.extract_strided_slice %194 {offsets = [0, 1, 0], sizes = [2, 1, 32], strides = [1, 1, 1]} : vector<2x8x32xf32> to vector<2x1x32xf32>
    %205 = vector.shape_cast %204 : vector<2x1x32xf32> to vector<2x32xf32>
    %cst_57 = arith.constant dense<0.000000e+00> : vector<2x32xf32>
    %206 = tpu.matmul %200, %189, %cst_57 {dimension_numbers = #tpu.dot_dimension_numbers<[1], [0], [0], [1], [0, 0, 1, 1], [], []>} : vector<2x32xf32>, vector<32x32xf32>, vector<2x32xf32> -> vector<2x32xf32>
    %207 = arith.addf %205, %206 : vector<2x32xf32>
    %208 = math.tanh %207 : vector<2x32xf32>
    %c0_58 = arith.constant 0 : index
    %c1_59 = arith.constant 1 : index
    %c0_60 = arith.constant 0 : index
    %209 = vector.load %arg15[%c0_58, %c1_59, %c0_60] : memref<2x8x32xf32, #tpu.memory_space<vmem>>, vector<2x1x32xf32>
    %210 = vector.shape_cast %209 : vector<2x1x32xf32> to vector<2x32xf32>
    %211 = vector.shape_cast %208 : vector<2x32xf32> to vector<2x1x32xf32>
    tpu.vector_store %arg15[%c0_58, %c1_59, %c0_60], %211 {strides = array<i32>} : memref<2x8x32xf32, #tpu.memory_space<vmem>>, vector<2x1x32xf32>,
    %212 = vector.extract_strided_slice %194 {offsets = [0, 2, 0], sizes = [2, 1, 32], strides = [1, 1, 1]} : vector<2x8x32xf32> to vector<2x1x32xf32>
    %213 = vector.shape_cast %212 : vector<2x1x32xf32> to vector<2x32xf32>
    %cst_61 = arith.constant dense<0.000000e+00> : vector<2x32xf32>
    %214 = tpu.matmul %208, %189, %cst_61 {dimension_numbers = #tpu.dot_dimension_numbers<[1], [0], [0], [1], [0, 0, 1, 1], [], []>} : vector<2x32xf32>, vector<32x32xf32>, vector<2x32xf32> -> vector<2x32xf32>
    %215 = arith.addf %213, %214 : vector<2x32xf32>
    %216 = math.tanh %215 : vector<2x32xf32>
    %c0_62 = arith.constant 0 : index
    %c2_63 = arith.constant 2 : index
    %c0_64 = arith.constant 0 : index
    %217 = vector.load %arg15[%c0_62, %c2_63, %c0_64] : memref<2x8x32xf32, #tpu.memory_space<vmem>>, vector<2x1x32xf32>
    %218 = vector.shape_cast %217 : vector<2x1x32xf32> to vector<2x32xf32>
    %219 = vector.shape_cast %216 : vector<2x32xf32> to vector<2x1x32xf32>
    tpu.vector_store %arg15[%c0_62, %c2_63, %c0_64], %219 {strides = array<i32>} : memref<2x8x32xf32, #tpu.memory_space<vmem>>, vector<2x1x32xf32>,
    %220 = vector.extract_strided_slice %194 {offsets = [0, 3, 0], sizes = [2, 1, 32], strides = [1, 1, 1]} : vector<2x8x32xf32> to vector<2x1x32xf32>
    %221 = vector.shape_cast %220 : vector<2x1x32xf32> to vector<2x32xf32>
    %cst_65 = arith.constant dense<0.000000e+00> : vector<2x32xf32>
    %222 = tpu.matmul %216, %189, %cst_65 {dimension_numbers = #tpu.dot_dimension_numbers<[1], [0], [0], [1], [0, 0, 1, 1], [], []>} : vector<2x32xf32>, vector<32x32xf32>, vector<2x32xf32> -> vector<2x32xf32>
    %223 = arith.addf %221, %222 : vector<2x32xf32>
    %224 = math.tanh %223 : vector<2x32xf32>
    %c0_66 = arith.constant 0 : index
    %c3_67 = arith.constant 3 : index
    %c0_68 = arith.constant 0 : index
    %225 = vector.load %arg15[%c0_66, %c3_67, %c0_68] : memref<2x8x32xf32, #tpu.memory_space<vmem>>, vector<2x1x32xf32>
    %226 = vector.shape_cast %225 : vector<2x1x32xf32> to vector<2x32xf32>
    %227 = vector.shape_cast %224 : vector<2x32xf32> to vector<2x1x32xf32>
    tpu.vector_store %arg15[%c0_66, %c3_67, %c0_68], %227 {strides = array<i32>} : memref<2x8x32xf32, #tpu.memory_space<vmem>>, vector<2x1x32xf32>,
    %228 = vector.extract_strided_slice %194 {offsets = [0, 4, 0], sizes = [2, 1, 32], strides = [1, 1, 1]} : vector<2x8x32xf32> to vector<2x1x32xf32>
    %229 = vector.shape_cast %228 : vector<2x1x32xf32> to vector<2x32xf32>
    %cst_69 = arith.constant dense<0.000000e+00> : vector<2x32xf32>
    %230 = tpu.matmul %224, %189, %cst_69 {dimension_numbers = #tpu.dot_dimension_numbers<[1], [0], [0], [1], [0, 0, 1, 1], [], []>} : vector<2x32xf32>, vector<32x32xf32>, vector<2x32xf32> -> vector<2x32xf32>
    %231 = arith.addf %229, %230 : vector<2x32xf32>
    %232 = math.tanh %231 : vector<2x32xf32>
    %c0_70 = arith.constant 0 : index
    %c4_71 = arith.constant 4 : index
    %c0_72 = arith.constant 0 : index
    %233 = vector.load %arg15[%c0_70, %c4_71, %c0_72] : memref<2x8x32xf32, #tpu.memory_space<vmem>>, vector<2x1x32xf32>
    %234 = vector.shape_cast %233 : vector<2x1x32xf32> to vector<2x32xf32>
    %235 = vector.shape_cast %232 : vector<2x32xf32> to vector<2x1x32xf32>
    tpu.vector_store %arg15[%c0_70, %c4_71, %c0_72], %235 {strides = array<i32>} : memref<2x8x32xf32, #tpu.memory_space<vmem>>, vector<2x1x32xf32>,
    %236 = vector.extract_strided_slice %194 {offsets = [0, 5, 0], sizes = [2, 1, 32], strides = [1, 1, 1]} : vector<2x8x32xf32> to vector<2x1x32xf32>
    %237 = vector.shape_cast %236 : vector<2x1x32xf32> to vector<2x32xf32>
    %cst_73 = arith.constant dense<0.000000e+00> : vector<2x32xf32>
    %238 = tpu.matmul %232, %189, %cst_73 {dimension_numbers = #tpu.dot_dimension_numbers<[1], [0], [0], [1], [0, 0, 1, 1], [], []>} : vector<2x32xf32>, vector<32x32xf32>, vector<2x32xf32> -> vector<2x32xf32>
    %239 = arith.addf %237, %238 : vector<2x32xf32>
    %240 = math.tanh %239 : vector<2x32xf32>
    %c0_74 = arith.constant 0 : index
    %c5_75 = arith.constant 5 : index
    %c0_76 = arith.constant 0 : index
    %241 = vector.load %arg15[%c0_74, %c5_75, %c0_76] : memref<2x8x32xf32, #tpu.memory_space<vmem>>, vector<2x1x32xf32>
    %242 = vector.shape_cast %241 : vector<2x1x32xf32> to vector<2x32xf32>
    %243 = vector.shape_cast %240 : vector<2x32xf32> to vector<2x1x32xf32>
    tpu.vector_store %arg15[%c0_74, %c5_75, %c0_76], %243 {strides = array<i32>} : memref<2x8x32xf32, #tpu.memory_space<vmem>>, vector<2x1x32xf32>,
    %244 = vector.extract_strided_slice %194 {offsets = [0, 6, 0], sizes = [2, 1, 32], strides = [1, 1, 1]} : vector<2x8x32xf32> to vector<2x1x32xf32>
    %245 = vector.shape_cast %244 : vector<2x1x32xf32> to vector<2x32xf32>
    %cst_77 = arith.constant dense<0.000000e+00> : vector<2x32xf32>
    %246 = tpu.matmul %240, %189, %cst_77 {dimension_numbers = #tpu.dot_dimension_numbers<[1], [0], [0], [1], [0, 0, 1, 1], [], []>} : vector<2x32xf32>, vector<32x32xf32>, vector<2x32xf32> -> vector<2x32xf32>
    %247 = arith.addf %245, %246 : vector<2x32xf32>
    %248 = math.tanh %247 : vector<2x32xf32>
    %c0_78 = arith.constant 0 : index
    %c6_79 = arith.constant 6 : index
    %c0_80 = arith.constant 0 : index
    %249 = vector.load %arg15[%c0_78, %c6_79, %c0_80] : memref<2x8x32xf32, #tpu.memory_space<vmem>>, vector<2x1x32xf32>
    %250 = vector.shape_cast %249 : vector<2x1x32xf32> to vector<2x32xf32>
    %251 = vector.shape_cast %248 : vector<2x32xf32> to vector<2x1x32xf32>
    tpu.vector_store %arg15[%c0_78, %c6_79, %c0_80], %251 {strides = array<i32>} : memref<2x8x32xf32, #tpu.memory_space<vmem>>, vector<2x1x32xf32>,
    %252 = vector.extract_strided_slice %194 {offsets = [0, 7, 0], sizes = [2, 1, 32], strides = [1, 1, 1]} : vector<2x8x32xf32> to vector<2x1x32xf32>
    %253 = vector.shape_cast %252 : vector<2x1x32xf32> to vector<2x32xf32>
    %cst_81 = arith.constant dense<0.000000e+00> : vector<2x32xf32>
    %254 = tpu.matmul %248, %189, %cst_81 {dimension_numbers = #tpu.dot_dimension_numbers<[1], [0], [0], [1], [0, 0, 1, 1], [], []>} : vector<2x32xf32>, vector<32x32xf32>, vector<2x32xf32> -> vector<2x32xf32>
    %255 = arith.addf %253, %254 : vector<2x32xf32>
    %256 = math.tanh %255 : vector<2x32xf32>
    %c0_82 = arith.constant 0 : index
    %c7_83 = arith.constant 7 : index
    %c0_84 = arith.constant 0 : index
    %257 = vector.load %arg15[%c0_82, %c7_83, %c0_84] : memref<2x8x32xf32, #tpu.memory_space<vmem>>, vector<2x1x32xf32>
    %258 = vector.shape_cast %257 : vector<2x1x32xf32> to vector<2x32xf32>
    %259 = vector.shape_cast %256 : vector<2x32xf32> to vector<2x1x32xf32>
    tpu.vector_store %arg15[%c0_82, %c7_83, %c0_84], %259 {strides = array<i32>} : memref<2x8x32xf32, #tpu.memory_space<vmem>>, vector<2x1x32xf32>,
    %c0_85 = arith.constant 0 : index
    %c0_86 = arith.constant 0 : index
    %c0_87 = arith.constant 0 : index
    %260 = vector.load %arg13[%c0_85, %c0_86, %c0_87] : memref<2x2x32xf32, #tpu.memory_space<vmem>>, vector<1x2x32xf32>
    %261 = vector.shape_cast %260 : vector<1x2x32xf32> to vector<2x32xf32>
    %262 = vector.shape_cast %256 : vector<2x32xf32> to vector<1x2x32xf32>
    tpu.vector_store %arg13[%c0_85, %c0_86, %c0_87], %262 {strides = array<i32>} : memref<2x2x32xf32, #tpu.memory_space<vmem>>, vector<1x2x32xf32>,
    %c0_88 = arith.constant 0 : index
    %c0_89 = arith.constant 0 : index
    %c0_90 = arith.constant 0 : index
    %263 = vector.load %arg15[%c0_88, %c0_89, %c0_90] : memref<2x8x32xf32, #tpu.memory_space<vmem>>, vector<2x8x32xf32>
    %264 = vector.shape_cast %263 : vector<2x8x32xf32> to vector<16x32xf32>
    %c0_91 = arith.constant 0 : index
    %c0_92 = arith.constant 0 : index
    %265 = vector.load %arg7[%c0_91, %c0_92] : memref<32x32xf32, #tpu.memory_space<vmem>>, vector<32x32xf32>
    %c0_93 = arith.constant 0 : index
    %c0_94 = arith.constant 0 : index
    %266 = vector.load %arg8[%c0_93, %c0_94] : memref<32x32xf32, #tpu.memory_space<vmem>>, vector<32x32xf32>
    %c0_95 = arith.constant 0 : index
    %c0_96 = arith.constant 0 : index
    %267 = vector.load %arg9[%c0_95, %c0_96] : memref<1x32xf32, #tpu.memory_space<vmem>>, vector<1x32xf32>
    %cst_97 = arith.constant dense<0.000000e+00> : vector<16x32xf32>
    %268 = tpu.matmul %264, %265, %cst_97 {dimension_numbers = #tpu.dot_dimension_numbers<[1], [0], [0], [1], [0, 0, 1, 1], [], []>} : vector<16x32xf32>, vector<32x32xf32>, vector<16x32xf32> -> vector<16x32xf32>
    %269 = vector.broadcast %267 : vector<1x32xf32> to vector<16x32xf32>
    %270 = arith.addf %268, %269 : vector<16x32xf32>
    %271 = vector.shape_cast %270 : vector<16x32xf32> to vector<2x8x32xf32>
    %cst_98 = arith.constant 0.000000e+00 : f32
    %272 = vector.broadcast %cst_98 : f32 to vector<2x32xf32>
    %273 = vector.extract_strided_slice %271 {offsets = [0, 0, 0], sizes = [2, 1, 32], strides = [1, 1, 1]} : vector<2x8x32xf32> to vector<2x1x32xf32>
    %274 = vector.shape_cast %273 : vector<2x1x32xf32> to vector<2x32xf32>
    %cst_99 = arith.constant dense<0.000000e+00> : vector<2x32xf32>
    %275 = tpu.matmul %272, %266, %cst_99 {dimension_numbers = #tpu.dot_dimension_numbers<[1], [0], [0], [1], [0, 0, 1, 1], [], []>} : vector<2x32xf32>, vector<32x32xf32>, vector<2x32xf32> -> vector<2x32xf32>
    %276 = arith.addf %274, %275 : vector<2x32xf32>
    %277 = math.tanh %276 : vector<2x32xf32>
    %c0_100 = arith.constant 0 : index
    %c0_101 = arith.constant 0 : index
    %c0_102 = arith.constant 0 : index
    %278 = vector.load %arg15[%c0_100, %c0_101, %c0_102] : memref<2x8x32xf32, #tpu.memory_space<vmem>>, vector<2x1x32xf32>
    %279 = vector.shape_cast %278 : vector<2x1x32xf32> to vector<2x32xf32>
    %280 = vector.shape_cast %277 : vector<2x32xf32> to vector<2x1x32xf32>
    tpu.vector_store %arg15[%c0_100, %c0_101, %c0_102], %280 {strides = array<i32>} : memref<2x8x32xf32, #tpu.memory_space<vmem>>, vector<2x1x32xf32>,
    %281 = vector.extract_strided_slice %271 {offsets = [0, 1, 0], sizes = [2, 1, 32], strides = [1, 1, 1]} : vector<2x8x32xf32> to vector<2x1x32xf32>
    %282 = vector.shape_cast %281 : vector<2x1x32xf32> to vector<2x32xf32>
    %cst_103 = arith.constant dense<0.000000e+00> : vector<2x32xf32>
    %283 = tpu.matmul %277, %266, %cst_103 {dimension_numbers = #tpu.dot_dimension_numbers<[1], [0], [0], [1], [0, 0, 1, 1], [], []>} : vector<2x32xf32>, vector<32x32xf32>, vector<2x32xf32> -> vector<2x32xf32>
    %284 = arith.addf %282, %283 : vector<2x32xf32>
    %285 = math.tanh %284 : vector<2x32xf32>
    %c0_104 = arith.constant 0 : index
    %c1_105 = arith.constant 1 : index
    %c0_106 = arith.constant 0 : index
    %286 = vector.load %arg15[%c0_104, %c1_105, %c0_106] : memref<2x8x32xf32, #tpu.memory_space<vmem>>, vector<2x1x32xf32>
    %287 = vector.shape_cast %286 : vector<2x1x32xf32> to vector<2x32xf32>
    %288 = vector.shape_cast %285 : vector<2x32xf32> to vector<2x1x32xf32>
    tpu.vector_store %arg15[%c0_104, %c1_105, %c0_106], %288 {strides = array<i32>} : memref<2x8x32xf32, #tpu.memory_space<vmem>>, vector<2x1x32xf32>,
    %289 = vector.extract_strided_slice %271 {offsets = [0, 2, 0], sizes = [2, 1, 32], strides = [1, 1, 1]} : vector<2x8x32xf32> to vector<2x1x32xf32>
    %290 = vector.shape_cast %289 : vector<2x1x32xf32> to vector<2x32xf32>
    %cst_107 = arith.constant dense<0.000000e+00> : vector<2x32xf32>
    %291 = tpu.matmul %285, %266, %cst_107 {dimension_numbers = #tpu.dot_dimension_numbers<[1], [0], [0], [1], [0, 0, 1, 1], [], []>} : vector<2x32xf32>, vector<32x32xf32>, vector<2x32xf32> -> vector<2x32xf32>
    %292 = arith.addf %290, %291 : vector<2x32xf32>
    %293 = math.tanh %292 : vector<2x32xf32>
    %c0_108 = arith.constant 0 : index
    %c2_109 = arith.constant 2 : index
    %c0_110 = arith.constant 0 : index
    %294 = vector.load %arg15[%c0_108, %c2_109, %c0_110] : memref<2x8x32xf32, #tpu.memory_space<vmem>>, vector<2x1x32xf32>
    %295 = vector.shape_cast %294 : vector<2x1x32xf32> to vector<2x32xf32>
    %296 = vector.shape_cast %293 : vector<2x32xf32> to vector<2x1x32xf32>
    tpu.vector_store %arg15[%c0_108, %c2_109, %c0_110], %296 {strides = array<i32>} : memref<2x8x32xf32, #tpu.memory_space<vmem>>, vector<2x1x32xf32>,
    %297 = vector.extract_strided_slice %271 {offsets = [0, 3, 0], sizes = [2, 1, 32], strides = [1, 1, 1]} : vector<2x8x32xf32> to vector<2x1x32xf32>
    %298 = vector.shape_cast %297 : vector<2x1x32xf32> to vector<2x32xf32>
    %cst_111 = arith.constant dense<0.000000e+00> : vector<2x32xf32>
    %299 = tpu.matmul %293, %266, %cst_111 {dimension_numbers = #tpu.dot_dimension_numbers<[1], [0], [0], [1], [0, 0, 1, 1], [], []>} : vector<2x32xf32>, vector<32x32xf32>, vector<2x32xf32> -> vector<2x32xf32>
    %300 = arith.addf %298, %299 : vector<2x32xf32>
    %301 = math.tanh %300 : vector<2x32xf32>
    %c0_112 = arith.constant 0 : index
    %c3_113 = arith.constant 3 : index
    %c0_114 = arith.constant 0 : index
    %302 = vector.load %arg15[%c0_112, %c3_113, %c0_114] : memref<2x8x32xf32, #tpu.memory_space<vmem>>, vector<2x1x32xf32>
    %303 = vector.shape_cast %302 : vector<2x1x32xf32> to vector<2x32xf32>
    %304 = vector.shape_cast %301 : vector<2x32xf32> to vector<2x1x32xf32>
    tpu.vector_store %arg15[%c0_112, %c3_113, %c0_114], %304 {strides = array<i32>} : memref<2x8x32xf32, #tpu.memory_space<vmem>>, vector<2x1x32xf32>,
    %305 = vector.extract_strided_slice %271 {offsets = [0, 4, 0], sizes = [2, 1, 32], strides = [1, 1, 1]} : vector<2x8x32xf32> to vector<2x1x32xf32>
    %306 = vector.shape_cast %305 : vector<2x1x32xf32> to vector<2x32xf32>
    %cst_115 = arith.constant dense<0.000000e+00> : vector<2x32xf32>
    %307 = tpu.matmul %301, %266, %cst_115 {dimension_numbers = #tpu.dot_dimension_numbers<[1], [0], [0], [1], [0, 0, 1, 1], [], []>} : vector<2x32xf32>, vector<32x32xf32>, vector<2x32xf32> -> vector<2x32xf32>
    %308 = arith.addf %306, %307 : vector<2x32xf32>
    %309 = math.tanh %308 : vector<2x32xf32>
    %c0_116 = arith.constant 0 : index
    %c4_117 = arith.constant 4 : index
    %c0_118 = arith.constant 0 : index
    %310 = vector.load %arg15[%c0_116, %c4_117, %c0_118] : memref<2x8x32xf32, #tpu.memory_space<vmem>>, vector<2x1x32xf32>
    %311 = vector.shape_cast %310 : vector<2x1x32xf32> to vector<2x32xf32>
    %312 = vector.shape_cast %309 : vector<2x32xf32> to vector<2x1x32xf32>
    tpu.vector_store %arg15[%c0_116, %c4_117, %c0_118], %312 {strides = array<i32>} : memref<2x8x32xf32, #tpu.memory_space<vmem>>, vector<2x1x32xf32>,
    %313 = vector.extract_strided_slice %271 {offsets = [0, 5, 0], sizes = [2, 1, 32], strides = [1, 1, 1]} : vector<2x8x32xf32> to vector<2x1x32xf32>
    %314 = vector.shape_cast %313 : vector<2x1x32xf32> to vector<2x32xf32>
    %cst_119 = arith.constant dense<0.000000e+00> : vector<2x32xf32>
    %315 = tpu.matmul %309, %266, %cst_119 {dimension_numbers = #tpu.dot_dimension_numbers<[1], [0], [0], [1], [0, 0, 1, 1], [], []>} : vector<2x32xf32>, vector<32x32xf32>, vector<2x32xf32> -> vector<2x32xf32>
    %316 = arith.addf %314, %315 : vector<2x32xf32>
    %317 = math.tanh %316 : vector<2x32xf32>
    %c0_120 = arith.constant 0 : index
    %c5_121 = arith.constant 5 : index
    %c0_122 = arith.constant 0 : index
    %318 = vector.load %arg15[%c0_120, %c5_121, %c0_122] : memref<2x8x32xf32, #tpu.memory_space<vmem>>, vector<2x1x32xf32>
    %319 = vector.shape_cast %318 : vector<2x1x32xf32> to vector<2x32xf32>
    %320 = vector.shape_cast %317 : vector<2x32xf32> to vector<2x1x32xf32>
    tpu.vector_store %arg15[%c0_120, %c5_121, %c0_122], %320 {strides = array<i32>} : memref<2x8x32xf32, #tpu.memory_space<vmem>>, vector<2x1x32xf32>,
    %321 = vector.extract_strided_slice %271 {offsets = [0, 6, 0], sizes = [2, 1, 32], strides = [1, 1, 1]} : vector<2x8x32xf32> to vector<2x1x32xf32>
    %322 = vector.shape_cast %321 : vector<2x1x32xf32> to vector<2x32xf32>
    %cst_123 = arith.constant dense<0.000000e+00> : vector<2x32xf32>
    %323 = tpu.matmul %317, %266, %cst_123 {dimension_numbers = #tpu.dot_dimension_numbers<[1], [0], [0], [1], [0, 0, 1, 1], [], []>} : vector<2x32xf32>, vector<32x32xf32>, vector<2x32xf32> -> vector<2x32xf32>
    %324 = arith.addf %322, %323 : vector<2x32xf32>
    %325 = math.tanh %324 : vector<2x32xf32>
    %c0_124 = arith.constant 0 : index
    %c6_125 = arith.constant 6 : index
    %c0_126 = arith.constant 0 : index
    %326 = vector.load %arg15[%c0_124, %c6_125, %c0_126] : memref<2x8x32xf32, #tpu.memory_space<vmem>>, vector<2x1x32xf32>
    %327 = vector.shape_cast %326 : vector<2x1x32xf32> to vector<2x32xf32>
    %328 = vector.shape_cast %325 : vector<2x32xf32> to vector<2x1x32xf32>
    tpu.vector_store %arg15[%c0_124, %c6_125, %c0_126], %328 {strides = array<i32>} : memref<2x8x32xf32, #tpu.memory_space<vmem>>, vector<2x1x32xf32>,
    %329 = vector.extract_strided_slice %271 {offsets = [0, 7, 0], sizes = [2, 1, 32], strides = [1, 1, 1]} : vector<2x8x32xf32> to vector<2x1x32xf32>
    %330 = vector.shape_cast %329 : vector<2x1x32xf32> to vector<2x32xf32>
    %cst_127 = arith.constant dense<0.000000e+00> : vector<2x32xf32>
    %331 = tpu.matmul %325, %266, %cst_127 {dimension_numbers = #tpu.dot_dimension_numbers<[1], [0], [0], [1], [0, 0, 1, 1], [], []>} : vector<2x32xf32>, vector<32x32xf32>, vector<2x32xf32> -> vector<2x32xf32>
    %332 = arith.addf %330, %331 : vector<2x32xf32>
    %333 = math.tanh %332 : vector<2x32xf32>
    %c0_128 = arith.constant 0 : index
    %c7_129 = arith.constant 7 : index
    %c0_130 = arith.constant 0 : index
    %334 = vector.load %arg15[%c0_128, %c7_129, %c0_130] : memref<2x8x32xf32, #tpu.memory_space<vmem>>, vector<2x1x32xf32>
    %335 = vector.shape_cast %334 : vector<2x1x32xf32> to vector<2x32xf32>
    %336 = vector.shape_cast %333 : vector<2x32xf32> to vector<2x1x32xf32>
    tpu.vector_store %arg15[%c0_128, %c7_129, %c0_130], %336 {strides = array<i32>} : memref<2x8x32xf32, #tpu.memory_space<vmem>>, vector<2x1x32xf32>,
    %c1_131 = arith.constant 1 : index
    %c0_132 = arith.constant 0 : index
    %c0_133 = arith.constant 0 : index
    %337 = vector.load %arg13[%c1_131, %c0_132, %c0_133] : memref<2x2x32xf32, #tpu.memory_space<vmem>>, vector<1x2x32xf32>
    %338 = vector.shape_cast %337 : vector<1x2x32xf32> to vector<2x32xf32>
    %339 = vector.shape_cast %333 : vector<2x32xf32> to vector<1x2x32xf32>
    tpu.vector_store %arg13[%c1_131, %c0_132, %c0_133], %339 {strides = array<i32>} : memref<2x2x32xf32, #tpu.memory_space<vmem>>, vector<1x2x32xf32>,
    %c0_134 = arith.constant 0 : index
    %c0_135 = arith.constant 0 : index
    %c0_136 = arith.constant 0 : index
    %340 = vector.load %arg15[%c0_134, %c0_135, %c0_136] : memref<2x8x32xf32, #tpu.memory_space<vmem>>, vector<2x8x32xf32>
    %341 = vector.shape_cast %340 : vector<2x8x32xf32> to vector<16x32xf32>
    %c0_137 = arith.constant 0 : index
    %c0_138 = arith.constant 0 : index
    %342 = vector.load %arg10[%c0_137, %c0_138] : memref<32x32xf32, #tpu.memory_space<vmem>>, vector<32x32xf32>
    %cst_139 = arith.constant dense<0.000000e+00> : vector<16x32xf32>
    %343 = tpu.matmul %341, %342, %cst_139 {dimension_numbers = #tpu.dot_dimension_numbers<[1], [0], [0], [1], [0, 0, 1, 1], [], []>} : vector<16x32xf32>, vector<32x32xf32>, vector<16x32xf32> -> vector<16x32xf32>
    %c0_140 = arith.constant 0 : index
    %c0_141 = arith.constant 0 : index
    %344 = vector.load %arg11[%c0_140, %c0_141] : memref<1x32xf32, #tpu.memory_space<vmem>>, vector<1x32xf32>
    %345 = vector.broadcast %344 : vector<1x32xf32> to vector<16x32xf32>
    %346 = arith.addf %343, %345 : vector<16x32xf32>
    %c0_142 = arith.constant 0 : index
    %c0_143 = arith.constant 0 : index
    %347 = vector.load %arg12[%c0_142, %c0_143] : memref<16x32xf32, #tpu.memory_space<vmem>>, vector<16x32xf32>
    tpu.vector_store %arg12[%c0_142, %c0_143], %346 {strides = array<i32>} : memref<16x32xf32, #tpu.memory_space<vmem>>, vector<16x32xf32>,
    return
  }
}

</mosaic_0001>

<bundles_post_ra>
// kernel: tpu_custom_call.1
= control target key start
LH: loop header
LB: loop body
LE: loop exit
PB: predicated region body
PF: predicated region fallthrough
CT: control target
= control target key end

     0   :  { %19 = vsyncpa [#allocation5], 0  ;;  %s3020_s0 = inlined_call_operand.hbm [shape: f32[16,32], index: 0, kind: input, shape index: {}]   ;;  %s3021_s1 = inlined_call_operand.hbm [shape: f32[32,64], index: 1, kind: input, shape index: {}]   ;;  %s3022_s2 = inlined_call_operand.vmem [shape: f32[1,64], index: 2, kind: input, shape index: {}]   ;;  %s3023_s3 = inlined_call_operand.hbm [shape: f32[16,64], index: 3, kind: input, shape index: {}]   ;;  %s3024_s4 = inlined_call_operand.hbm [shape: f32[16,32], index: 4, kind: input, shape index: {}]   ;;  %s3025_s5 = inlined_call_operand.hbm [shape: f32[32,32], index: 5, kind: input, shape index: {}]   ;;  %s3026_s6 = inlined_call_operand.vmem [shape: f32[1,32], index: 6, kind: input, shape index: {}]   ;;  %s3027_s7 = inlined_call_operand.hbm [shape: f32[32,32], index: 7, kind: input, shape index: {}]   ;;  %s3028_s8 = inlined_call_operand.hbm [shape: f32[32,32], index: 8, kind: input, shape index: {}]   ;;  %s3029_s9 = inlined_call_operand.vmem [shape: f32[1,32], index: 9, kind: input, shape index: {}]   ;;  %s3030_s10 = inlined_call_operand.hbm [shape: f32[32,32], index: 10, kind: input, shape index: {}]   ;;  %s3031_s11 = inlined_call_operand.vmem [shape: f32[1,32], index: 11, kind: input, shape index: {}]   ;;  %s3032_s12 = inlined_call_operand.hbm [shape: f32[16,32], index: 12, kind: output, shape index: {0}]   ;;  %s3033_s13 = inlined_call_operand.hbm [shape: f32[2,2,32], index: 13, kind: output, shape index: {1}]  }
   0x1   :  { %20 = vsyncpa [#allocation8], 0 }
   0x2   :  { %21 = vsyncpa [#allocation11], 0 }
   0x3   :  { %22 = vsyncpa [#allocation14], 0 }
   0x4   :  { %23 = vsyncpa [#allocation17], 0 }
   0x5   :  { %24 = vsyncpa [#allocation6], 0 }
   0x6   :  { %25 = vsyncpa [#allocation20], 0  ;;  %s43_s27 = sshll.u32 %s3021_s1, 4  ;;  %s2490_s28 = smov [#allocation7]   ;;  %s44_s27 = int_to_ptr.hbm [resolvable:$true] %s43_s27 }
   0x7   :  { %s45_s29 = sshll.u32 %s2490_s28, 4  ;;  %s71_s15 = sshll.u32 %s3024_s4, 4  ;;  %s46_s29 = int_to_ptr.vmem [resolvable:$true] %s45_s29  ;;  %s72_s15 = int_to_ptr.hbm [resolvable:$true] %s71_s15 }
   0x8   :  { %s2491_s16 = smov 128   ;;  %s2492_s17 = smov 8  }
   0x9   :  { %51 = dma.hbm_to_vmem [thread:$0]  %s44_s27, 512, %s46_s29, [#allocation8], %s2491_s16, %s2491_s16, %s2492_s17  }
   0xa   :  { %s2493_s18 = smov [#allocation10]   ;;  %s99_s1 = sshll.u32 %s3027_s7, 4  ;;  %s100_s1 = int_to_ptr.hbm [resolvable:$true] %s99_s1 }
   0xb   :  { %s73_s19 = sshll.u32 %s2493_s18, 4  ;;  %s30_s23 = sshll.u32 %s3020_s0, 4  ;;  %s74_s19 = int_to_ptr.vmem [resolvable:$true] %s73_s19  ;;  %s31_s23 = int_to_ptr.hbm [resolvable:$true] %s30_s23 }
   0xc   :  { %79 = dma.hbm_to_vmem [thread:$0]  %s72_s15, 256, %s74_s19, [#allocation11], %s2491_s16, %s2491_s16, %s2492_s17  }
   0xd   :  { %s2494_s24 = smov [#allocation13]   ;;  %s2495_s26 = smov [#allocation4]  }
   0xe   :  { %s101_s25 = sshll.u32 %s2494_s24, 4  ;;  %s32_s7 = sshll.u32 %s2495_s26, 4  ;;  %s102_s25 = int_to_ptr.vmem [resolvable:$true] %s101_s25  ;;  %s33_s7 = int_to_ptr.vmem [resolvable:$true] %s32_s7 }
   0xf   :  { %107 = dma.hbm_to_vmem [thread:$0]  %s100_s1, 512, %s102_s25, [#allocation14], %s2491_s16, %s2491_s16, %s2492_s17  }
  0x10   :  { %s58_s29 = sshll.u32 %s3023_s3, 4  ;;  %s84_s14 = sshll.u32 %s3025_s5, 4  ;;  %s59_s29 = int_to_ptr.hbm [resolvable:$true] %s58_s29  ;;  %s85_s14 = int_to_ptr.hbm [resolvable:$true] %s84_s14 }
  0x11   :  { %38 = dma.hbm_to_vmem [thread:$0]  %s31_s23, 256, %s33_s7, [#allocation5], %s2491_s16, %s2491_s16, %s2492_s17  }
  0x12   :  { %s2496_s15 = smov [#allocation9]   ;;  %s2497_s19 = smov [#allocation12]  }
  0x13   :  { %s60_s18 = sshll.u32 %s2496_s15, 4  ;;  %s86_s3 = sshll.u32 %s2497_s19, 4  ;;  %s61_s18 = int_to_ptr.vmem [resolvable:$true] %s60_s18  ;;  %s87_s3 = int_to_ptr.vmem [resolvable:$true] %s86_s3 }
  0x14   :  { %66 = dma.hbm_to_vmem [thread:$0]  %s59_s29, 256, %s61_s18, [#allocation8], %s2491_s16, %s2491_s16, %s2492_s17  }
  0x15   :  { %s112_s1 = sshll.u32 %s3028_s8, 4  ;;  %s127_s22 = sshll.u32 %s3030_s10, 4  ;;  %s113_s1 = int_to_ptr.hbm [resolvable:$true] %s112_s1  ;;  %s128_s22 = int_to_ptr.hbm [resolvable:$true] %s127_s22 }
  0x16   :  { %92 = dma.hbm_to_vmem [thread:$0]  %s85_s14, 512, %s87_s3, [#allocation11], %s2491_s16, %s2491_s16, %s2492_s17  }
  0x17   :  { %s2498_s23 = smov [#allocation15]   ;;  %s2499_s25 = smov [#allocation16]  }
  0x18   :  { %s114_s24 = sshll.u32 %s2498_s23, 4  ;;  %s129_s8 = sshll.u32 %s2499_s25, 4  ;;  %s115_s24 = int_to_ptr.vmem [resolvable:$true] %s114_s24  ;;  %s130_s8 = int_to_ptr.vmem [resolvable:$true] %s129_s8 }
  0x19   :  { %120 = dma.hbm_to_vmem [thread:$0]  %s113_s1, 512, %s115_s24, [#allocation14], %s2491_s16, %s2491_s16, %s2492_s17  }
  0x1a   :  { %135 = dma.hbm_to_vmem [thread:$0]  %s128_s22, 512, %s130_s8, [#allocation17], %s2491_s16, %s2491_s16, %s2492_s17  }
  0x1b   :  { %2476 = dma.done.wait [#allocation5], 256  }
  0x1c   :  { %2477 = vsyncadd [#allocation5], 4294967040 }
  0x1d   :  { %2478 = dma.done.wait [#allocation8], 768  }
  0x1e   :  { %2479 = vsyncadd [#allocation8], 4294966528 }
  0x1f   :  { %2480 = dma.done.wait [#allocation11], 768  }
  0x20   :  { %2481 = vsyncadd [#allocation11], 4294966528 }
  0x21   :  { %2482 = dma.done.wait [#allocation14], 1024  }
  0x22   :  { %2483 = vsyncadd [#allocation14], 4294966272 }
  0x23   :  { %2484 = dma.done.wait [#allocation17], 512  }
  0x24   :  { %2485 = vsyncadd [#allocation17], 4294966784  ;;  %v175_v0 = vld [vmem:[#allocation7 + $0x18] sm:$0xff]  ;;  %v174_v1 = vld [vmem:[#allocation7 + $0x10] sm:$0xff]  ;;  %vm180_vm0 = vcmask 261120   ;;  %v2500_v7 = vmov 0.0  }
  0x25   :  { %199 = vmatpush.msra.mxu0 %v175_v0  ;;  %v2626_v2 = vld [vmem:[#allocation9 + $0x8] sm:$0xff]  ;;  %v2629_v4 = vld [vmem:[#allocation9] sm:$0xff]  ;;  %v170_v6 = vld [vmem:[#allocation4] sm:$0xff]  ;;  %s2501_s7 = smov 96   ;;  %s2503_s27 = smov 32   ;;  %vm328_vm9 = vcmask 1041409  }
  0x26   :  { %v173_v3 = vld [vmem:[#allocation7 + $0x8] sm:$0xff]  ;;  %230 = vmatpush.msra.mxu1 %v2626_v2  ;;  %348 = vmatpush.msra.mxu2 %v2626_v2  ;;  %v172_v5 = vld [vmem:[#allocation7] sm:$0xff]  ;;  %v171_v8 = vld [vmem:[#allocation4 + $0x8] sm:$0xff]  ;;  %s2504_s28 = smov 80   ;;  %vm212_vm10 = vcmask 130048   ;;  %s1955_s19 = sshll.u32 %s3033_s13, 4  ;;  %s1956_s19 = int_to_ptr.hbm [resolvable:$true] %s1955_s19 }
  0x27   :  { %200 = vmatpush.msra.mxu0 %v174_v1  ;;  %846 = vmatpush.msra.mxu3 %v2626_v2  ;;  %v2040_v11 = vld [vmem:[%s3022_s2] ss:$0 sm:$0xff]  ;;  %s2502_s2 = smov 16   ;;  %s2506_s3 = smov 2  }
  0x28   :  { %231 = vmatpush.msra.mxu1 %v2629_v4  ;;  %349 = vmatpush.msra.mxu2 %v2629_v4  ;;  %s2507_s1 = smov [#allocation18]   ;;  %s1942_s13 = sshll.u32 %s3032_s12, 4  ;;  %s1943_s13 = int_to_ptr.hbm [resolvable:$true] %s1942_s13 }
  0x29   :  { %201 = vmatpush.msra.mxu0 %v173_v3  ;;  %232 = vmatmul.f32.vlgmr.msra.gmra.mxu1 %v2500_v7  ;;  %s1940_s5 = sshll.u32 %s2507_s1, 4  ;;  %s1941_s5 = int_to_ptr.vmem [resolvable:$true] %s1940_s5 }
  0x2a   :  { %596 = vmatpush.msrb.mxu1 %v2626_v2  ;;  %721 = vmatpush.msrb.mxu2 %v2626_v2 }
  0x2b   :  { %202 = vmatpush.msra.mxu0 %v172_v5  ;;  %847 = vmatpush.msra.mxu3 %v2629_v4 }
  0x2c   :  { %1977 = vmatmul.msk.f32.vlgmr.msra.gmra.mxu0 %vm180_vm0, %v170_v6  ;;  %597 = vmatpush.msrb.mxu1 %v2629_v4 }
  0x2d   :  { %471 = vmatpush.msrb.mxu0 %v2626_v2  ;;  %722 = vmatpush.msrb.mxu2 %v2629_v4 }
  0x2e   :  { %971 = vmatpush.msra.mxu1 %v2626_v2 }
  0x2f   :  { %472 = vmatpush.msrb.mxu0 %v2629_v4 }
  0x30   :  { %972 = vmatpush.msra.mxu1 %v2629_v4 }
  0x34   :  { %1978 = vmatmul.msk.f32.gmra.mxu0 %vm180_vm0, %v171_v8 }
  0xa6   :  { %v233_v10 = vpop.f32.mrf.mxu1 }
  0xa7   :  { %v237_v12 = vrot.slane %v233_v10, 1 }
  0xa9   :  { %v204_v9 = vpop.f32.mrf.mxu0 }
  0xaa   :  { %v2653_v16 = vadd.f32 %v2040_v11, %v204_v9 }
  0xac   :  { %v240_v17 = vadd.f32 %v233_v10, %v2653_v16 }
  0xae   :  { %v1979_v21 = vmul.f32 -1.442695, %v240_v17 }
  0xb1   :  { %v207_v13 = vpop.f32.mrf.mxu0 }
  0xb2   :  { %v2650_v14 = vadd.f32 %v2040_v11, %v207_v13 }
  0xb4   :  { %v241_v15 = vadd.f32 %v237_v12, %v2650_v14 }
  0xb6   :  { %2044 = vtanh.f32 %v241_v15  ;;  %v1980_v20 = vmul.f32 -1.442695, %v241_v15 }
  0xb7   :  { %2046 = vtanh.f32 %v240_v17 }
  0xb8   :  { %2048 = vpow2.f32 %v1980_v20 }
  0xb9   :  { %2050 = vpow2.f32 %v1979_v21 }
  0xbc   :  { %v2045_v18 = vpop.eup %2044 }
  0xbd   :  { %288 = vrot.lane.b32.xlu0 %v2045_v18, %s2501_s7  ;;  %v2047_v19 = vpop.eup %2046 }
  0xbe   :  { %v2049_v22 = vpop.eup %2048 }
  0xbf   :  { %v249_v23 = vadd.f32 1.0, %v2049_v22  ;;  %v2051_v24 = vpop.eup %2050 }
  0xc0   :  { %v248_v25 = vadd.f32 1.0, %v2051_v24 }
  0xc1   :  { %2052 = vrcp.f32 %v249_v23  ;;  %v276_v34 = vand.u32 2147483648, %v249_v23  ;;  %vm270_vm2 = vweird.f32 %v249_v23  ;;  %v274_v35 = vand.u32 2147483647, %v249_v23 }
  0xc2   :  { %2054 = vrcp.f32 %v248_v25  ;;  %v261_v43 = vand.u32 2147483648, %v248_v25  ;;  %vm255_vm6 = vweird.f32 %v248_v25  ;;  %v259_v44 = vand.u32 2147483647, %v248_v25 }
  0xc3   :  { %v277_v38 = vor.u32 1.1754944e-38, %v276_v34  ;;  %vm275_vm4 = vcmp.eq.f32.partialorder %v274_v35, 8.507059e+37 }
  0xc4   :  { %v262_v46 = vor.u32 1.1754944e-38, %v261_v43  ;;  %vm260_vm8 = vcmp.eq.f32.partialorder %v259_v44, 8.507059e+37 }
  0xc5   :  { %286 = vrot.lane.b32.xlu0 %v2047_v19, %s2501_s7 }
  0xc7   :  { %v2053_v26 = vpop.eup %2052 }
  0xc8   :  { %v266_v27 = vmul.f32 %v2053_v26, %v249_v23  ;;  %v2055_v29 = vpop.eup %2054  ;;  %vm271_vm1 = vweird.f32 %v2053_v26 }
  0xc9   :  { %v251_v31 = vmul.f32 %v2055_v29, %v248_v25  ;;  %vm272_vm3 = vmor %vm270_vm2, %vm271_vm1  ;;  %vm256_vm5 = vweird.f32 %v2055_v29 }
  0xca   :  { %v267_v28 = vsub.f32 1.0, %v266_v27  ;;  %vm257_vm7 = vmor %vm255_vm6, %vm256_vm5 }
  0xcb   :  { %v252_v33 = vsub.f32 1.0, %v251_v31 }
  0xcc   :  { %v268_v30 = vmul.f32 %v2053_v26, %v267_v28 }
  0xcd   :  { %v253_v37 = vmul.f32 %v2055_v29, %v252_v33 }
  0xce   :  { %v269_v32 = vadd.f32 %v2053_v26, %v268_v30 }
  0xcf   :  { %v254_v42 = vadd.f32 %v2055_v29, %v253_v37 }
  0xd0   :  { %v273_v36 = vsel %vm272_vm3, %v2053_v26, %v269_v32 }
  0xd1   :  { %v278_v40 = vsel %vm275_vm4, %v277_v38, %v273_v36  ;;  %v258_v45 = vsel %vm257_vm7, %v2055_v29, %v254_v42 }
  0xd2   :  { %v263_v48 = vsel %vm260_vm8, %v262_v46, %v258_v45  ;;  %v283_v50 = vmul.f32 0.0, %v278_v40 }
  0xd3   :  { %v282_v53 = vmul.f32 0.0, %v263_v48 }
 0x12f   :  { %v289_v39 = vpop.permute.xlu0 %288 }
 0x130   :  { %v293_v41 = vmul.f32 %v289_v39, %v278_v40 }
 0x132   :  { %298 = vrot.lane.b32.xlu1 %v293_v41, %s2502_s2 }
 0x137   :  { %v287_v47 = vpop.permute.xlu0 %286 }
 0x138   :  { %v292_v49 = vmul.f32 %v287_v47, %v263_v48 }
 0x13a   :  { %296 = vrot.lane.b32.xlu1 %v292_v49, %s2502_s2 }
 0x1a4   :  { %v299_v51 = vpop.permute.xlu1 %298 }
 0x1a5   :  { %v2660_v52 = vadd.f32 %v299_v51, %v283_v50 }
 0x1a7   :  { %2056 = vtanh.f32 %v2660_v52 }
 0x1ac   :  { %v297_v54 = vpop.permute.xlu1 %296 }
 0x1ad   :  { %v2057_v55 = vpop.eup %2056  ;;  %v2663_v56 = vadd.f32 %v297_v54, %v282_v53 }
 0x1ae   :  { %310 = vrot.lane.b32.xlu2 %v2057_v55, %s2503_s27 }
 0x1af   :  { %2058 = vtanh.f32 %v2663_v56  ;;  %v402_v45 = vrot.slane %v2663_v56, 7 }
 0x1b5   :  { %v2059_v57 = vpop.eup %2058 }
 0x1b6   :  { %308 = vrot.lane.b32.xlu2 %v2059_v57, %s2503_s27 }
 0x208   :  { %v311_v58 = vpop.permute.xlu2 %310 }
 0x209   :  { %v2668_v59 = vmul.f32 %v311_v58, %v278_v40  ;;  %v403_v40 = vrot.slane %v2660_v52, 7 }
 0x20b   :  { %v327_v61 = vrot.slane %v2668_v59, 7 }
 0x210   :  { %v309_v60 = vpop.permute.xlu2 %308 }
 0x211   :  { %v2671_v62 = vmul.f32 %v309_v60, %v263_v48 }
 0x213   :  { %v329_v63 = vsel %vm328_vm9, %v327_v61, %v2671_v62 }
 0x214   :  { %330 = vrot.lane.b32.xlu0 %v329_v63, %s2504_s28 }
 0x286   :  { %v331_v0 = vpop.permute.xlu0 %330 }
 0x287   :  { %1981 = vmatmul.msk.f32.vlgmr.msra.gmra.mxu2 %vm212_vm10, %v331_v0 }
 0x288   :  { %1096 = vmatpush.msra.mxu2 %v2626_v2 }
 0x28a   :  { %1097 = vmatpush.msra.mxu2 %v2629_v4 }
 0x30a   :  { %v351_v1 = vpop.f32.mrf.mxu2 }
 0x30b   :  { %v355_v3 = vrot.slane %v351_v1, 7  ;;  %v359_v5 = vadd.f32 %v351_v1, %v2650_v14 }
 0x30d   :  { %v358_v6 = vadd.f32 %v355_v3, %v2653_v16  ;;  %2060 = vtanh.f32 %v359_v5  ;;  %v1983_v10 = vmul.f32 -1.442695, %v359_v5 }
 0x30f   :  { %2062 = vtanh.f32 %v358_v6  ;;  %v1982_v13 = vmul.f32 -1.442695, %v358_v6 }
 0x310   :  { %2064 = vpow2.f32 %v1983_v10 }
 0x313   :  { %v2061_v8 = vpop.eup %2060 }
 0x314   :  { %412 = vrot.lane.b32.xlu2 %v2061_v8, %s2501_s7 }
 0x315   :  { %v2063_v9 = vpop.eup %2062 }
 0x316   :  { %410 = vrot.lane.b32.xlu1 %v2063_v9, %s2501_s7  ;;  %v2065_v11 = vpop.eup %2064 }
 0x317   :  { %v367_v2 = vadd.f32 1.0, %v2065_v11 }
 0x319   :  { %2066 = vrcp.f32 %v367_v2  ;;  %v394_v20 = vand.u32 2147483648, %v367_v2  ;;  %vm388_vm12 = vweird.f32 %v367_v2  ;;  %v392_v22 = vand.u32 2147483647, %v367_v2 }
 0x31a   :  { %2068 = vpow2.f32 %v1982_v13 }
 0x31b   :  { %v395_v24 = vor.u32 1.1754944e-38, %v394_v20  ;;  %vm393_vm14 = vcmp.eq.f32.partialorder %v392_v22, 8.507059e+37 }
 0x31f   :  { %v2067_v4 = vpop.eup %2066 }
 0x320   :  { %v384_v12 = vmul.f32 %v2067_v4, %v367_v2  ;;  %v2069_v18 = vpop.eup %2068  ;;  %vm389_vm11 = vweird.f32 %v2067_v4 }
 0x321   :  { %v366_v21 = vadd.f32 1.0, %v2069_v18  ;;  %vm390_vm13 = vmor %vm388_vm12, %vm389_vm11 }
 0x322   :  { %v385_v15 = vsub.f32 1.0, %v384_v12 }
 0x323   :  { %2070 = vrcp.f32 %v366_v21  ;;  %v379_v33 = vand.u32 2147483648, %v366_v21  ;;  %vm373_vm1 = vweird.f32 %v366_v21  ;;  %v377_v34 = vand.u32 2147483647, %v366_v21 }
 0x324   :  { %v386_v17 = vmul.f32 %v2067_v4, %v385_v15 }
 0x325   :  { %v380_v36 = vor.u32 1.1754944e-38, %v379_v33  ;;  %vm378_vm3 = vcmp.eq.f32.partialorder %v377_v34, 8.507059e+37 }
 0x326   :  { %v387_v19 = vadd.f32 %v2067_v4, %v386_v17 }
 0x328   :  { %v391_v23 = vsel %vm390_vm13, %v2067_v4, %v387_v19 }
 0x329   :  { %v396_v26 = vsel %vm393_vm14, %v395_v24, %v391_v23  ;;  %v2071_v28 = vpop.eup %2070 }
 0x32a   :  { %v369_v29 = vmul.f32 %v2071_v28, %v366_v21  ;;  %vm374_vm15 = vweird.f32 %v2071_v28  ;;  %v407_v41 = vmul.f32 %v403_v40, %v396_v26 }
 0x32b   :  { %vm375_vm2 = vmor %vm373_vm1, %vm374_vm15 }
 0x32c   :  { %v370_v30 = vsub.f32 1.0, %v369_v29 }
 0x32e   :  { %v371_v31 = vmul.f32 %v2071_v28, %v370_v30 }
 0x330   :  { %v372_v32 = vadd.f32 %v2071_v28, %v371_v31 }
 0x332   :  { %v376_v35 = vsel %vm375_vm2, %v2071_v28, %v372_v32 }
 0x333   :  { %v381_v38 = vsel %vm378_vm3, %v380_v36, %v376_v35 }
 0x334   :  { %v406_v46 = vmul.f32 %v402_v45, %v381_v38 }
 0x36e   :  { %v413_v25 = vpop.permute.xlu2 %412 }
 0x36f   :  { %v417_v27 = vmul.f32 %v413_v25, %v396_v26 }
 0x371   :  { %422 = vrot.lane.b32.xlu1 %v417_v27, %s2502_s2 }
 0x388   :  { %v411_v37 = vpop.permute.xlu1 %410 }
 0x389   :  { %v416_v39 = vmul.f32 %v411_v37, %v381_v38 }
 0x38b   :  { %420 = vrot.lane.b32.xlu0 %v416_v39, %s2502_s2 }
 0x3e3   :  { %v423_v42 = vpop.permute.xlu1 %422 }
 0x3e4   :  { %v2686_v43 = vadd.f32 %v423_v42, %v407_v41 }
 0x3e6   :  { %2072 = vtanh.f32 %v2686_v43  ;;  %v527_v36 = vrot.slane %v2686_v43, 7 }
 0x3ec   :  { %v2073_v44 = vpop.eup %2072 }
 0x3ed   :  { %434 = vrot.lane.b32.xlu0 %v2073_v44, %s2503_s27 }
 0x3fd   :  { %v421_v47 = vpop.permute.xlu0 %420 }
 0x3fe   :  { %v2691_v48 = vadd.f32 %v421_v47, %v406_v46 }
 0x400   :  { %2074 = vtanh.f32 %v2691_v48  ;;  %v526_v35 = vrot.slane %v2691_v48, 7 }
 0x406   :  { %v2075_v49 = vpop.eup %2074 }
 0x407   :  { %432 = vrot.lane.b32.xlu2 %v2075_v49, %s2503_s27 }
 0x45f   :  { %v435_v50 = vpop.permute.xlu0 %434 }
 0x460   :  { %v2697_v53 = vmul.f32 %v435_v50, %v396_v26 }
 0x461   :  { %v433_v51 = vpop.permute.xlu2 %432 }
 0x462   :  { %v2695_v52 = vmul.f32 %v433_v51, %v381_v38 }
 0x464   :  { %v451_v54 = vrot.slane %v2695_v52, 1 }
 0x466   :  { %v452_v55 = vsel %vm328_vm9, %v2697_v53, %v451_v54 }
 0x467   :  { %453 = vrot.lane.b32.xlu1 %v452_v55, %s2504_s28 }
 0x4d9   :  { %v454_v56 = vpop.permute.xlu1 %453 }
 0x4da   :  { %1984 = vmatmul.msk.f32.vlgmr.msrb.gmra.mxu0 %vm212_vm10, %v454_v56 }
 0x557   :  { %v474_v57 = vpop.f32.mrf.mxu0 }
 0x558   :  { %v478_v58 = vrot.slane %v474_v57, 6  ;;  %v479_v60 = vrot.slane %v474_v57, 7 }
 0x55a   :  { %v482_v61 = vadd.f32 %v478_v58, %v2653_v16  ;;  %v483_v63 = vadd.f32 %v479_v60, %v2650_v14 }
 0x55c   :  { %2076 = vtanh.f32 %v482_v61  ;;  %v1985_v3 = vmul.f32 -1.442695, %v482_v61  ;;  %v1986_v9 = vmul.f32 -1.442695, %v483_v63 }
 0x55d   :  { %2078 = vtanh.f32 %v483_v63 }
 0x55e   :  { %2080 = vpow2.f32 %v1985_v3 }
 0x562   :  { %v2077_v0 = vpop.eup %2076 }
 0x563   :  { %v2079_v1 = vpop.eup %2078  ;;  %534 = vrot.lane.b32.xlu2 %v2077_v0, %s2501_s7 }
 0x564   :  { %536 = vrot.lane.b32.xlu0 %v2079_v1, %s2501_s7  ;;  %v2081_v5 = vpop.eup %2080 }
 0x565   :  { %v490_v6 = vadd.f32 1.0, %v2081_v5 }
 0x567   :  { %2082 = vrcp.f32 %v490_v6  ;;  %v503_v15 = vand.u32 2147483648, %v490_v6  ;;  %vm497_vm5 = vweird.f32 %v490_v6  ;;  %v501_v17 = vand.u32 2147483647, %v490_v6 }
 0x568   :  { %2084 = vpow2.f32 %v1986_v9 }
 0x569   :  { %v504_v19 = vor.u32 1.1754944e-38, %v503_v15  ;;  %vm502_vm7 = vcmp.eq.f32.partialorder %v501_v17, 8.507059e+37 }
 0x56d   :  { %v2083_v8 = vpop.eup %2082 }
 0x56e   :  { %v493_v10 = vmul.f32 %v2083_v8, %v490_v6  ;;  %v2085_v4 = vpop.eup %2084  ;;  %vm498_vm4 = vweird.f32 %v2083_v8 }
 0x56f   :  { %v491_v12 = vadd.f32 1.0, %v2085_v4  ;;  %vm499_vm6 = vmor %vm497_vm5, %vm498_vm4 }
 0x570   :  { %v494_v11 = vsub.f32 1.0, %v493_v10 }
 0x571   :  { %2086 = vrcp.f32 %v491_v12  ;;  %v518_v28 = vand.u32 2147483648, %v491_v12  ;;  %vm512_vm11 = vweird.f32 %v491_v12  ;;  %v516_v29 = vand.u32 2147483647, %v491_v12 }
 0x572   :  { %v495_v2 = vmul.f32 %v2083_v8, %v494_v11 }
 0x573   :  { %v519_v31 = vor.u32 1.1754944e-38, %v518_v28  ;;  %vm517_vm13 = vcmp.eq.f32.partialorder %v516_v29, 8.507059e+37 }
 0x574   :  { %v496_v13 = vadd.f32 %v2083_v8, %v495_v2 }
 0x576   :  { %v500_v18 = vsel %vm499_vm6, %v2083_v8, %v496_v13 }
 0x577   :  { %v505_v21 = vsel %vm502_vm7, %v504_v19, %v500_v18  ;;  %v2087_v23 = vpop.eup %2086 }
 0x578   :  { %v508_v24 = vmul.f32 %v2087_v23, %v491_v12  ;;  %vm513_vm8 = vweird.f32 %v2087_v23  ;;  %v530_v37 = vmul.f32 %v526_v35, %v505_v21 }
 0x579   :  { %vm514_vm12 = vmor %vm512_vm11, %vm513_vm8 }
 0x57a   :  { %v509_v25 = vsub.f32 1.0, %v508_v24 }
 0x57c   :  { %v510_v26 = vmul.f32 %v2087_v23, %v509_v25 }
 0x57e   :  { %v511_v27 = vadd.f32 %v2087_v23, %v510_v26 }
 0x580   :  { %v515_v30 = vsel %vm514_vm12, %v2087_v23, %v511_v27 }
 0x581   :  { %v520_v33 = vsel %vm517_vm13, %v519_v31, %v515_v30 }
 0x582   :  { %v531_v38 = vmul.f32 %v527_v36, %v520_v33 }
 0x5bd   :  { %v535_v20 = vpop.permute.xlu2 %534 }
 0x5be   :  { %v540_v22 = vmul.f32 %v535_v20, %v505_v21 }
 0x5c0   :  { %544 = vrot.lane.b32.xlu1 %v540_v22, %s2502_s2 }
 0x5d6   :  { %v537_v32 = vpop.permute.xlu0 %536 }
 0x5d7   :  { %v541_v34 = vmul.f32 %v537_v32, %v520_v33 }
 0x5d9   :  { %546 = vrot.lane.b32.xlu2 %v541_v34, %s2502_s2 }
 0x632   :  { %v545_v39 = vpop.permute.xlu1 %544 }
 0x633   :  { %v547_v40 = vpop.permute.xlu2 %546  ;;  %v2712_v41 = vadd.f32 %v545_v39, %v530_v37 }
 0x634   :  { %v2714_v42 = vadd.f32 %v547_v40, %v531_v38 }
 0x635   :  { %2088 = vtanh.f32 %v2712_v41 }
 0x636   :  { %2090 = vtanh.f32 %v2714_v42  ;;  %v652_v38 = vrot.slane %v2714_v42, 7 }
 0x63b   :  { %v2089_v44 = vpop.eup %2088 }
 0x63c   :  { %v2091_v45 = vpop.eup %2090  ;;  %556 = vrot.lane.b32.xlu0 %v2089_v44, %s2503_s27 }
 0x63d   :  { %558 = vrot.lane.b32.xlu1 %v2091_v45, %s2503_s27 }
 0x6ae   :  { %v557_v46 = vpop.permute.xlu0 %556 }
 0x6af   :  { %v559_v43 = vpop.permute.xlu1 %558  ;;  %v2720_v47 = vmul.f32 %v557_v46, %v505_v21 }
 0x6b0   :  { %v2722_v48 = vmul.f32 %v559_v43, %v520_v33  ;;  %v651_v33 = vrot.slane %v2712_v41, 7 }
 0x6b1   :  { %v575_v49 = vrot.slane %v2720_v47, 2 }
 0x6b2   :  { %v576_v50 = vrot.slane %v2722_v48, 1 }
 0x6b4   :  { %v577_v51 = vsel %vm328_vm9, %v576_v50, %v575_v49 }
 0x6b5   :  { %578 = vrot.lane.b32.xlu2 %v577_v51, %s2504_s28 }
 0x70f   :  { %v579_v54 = vpop.permute.xlu2 %578 }
 0x710   :  { %1987 = vmatmul.msk.f32.vlgmr.msrb.gmra.mxu1 %vm212_vm10, %v579_v54 }
 0x78d   :  { %v599_v55 = vpop.f32.mrf.mxu1 }
 0x78e   :  { %v603_v56 = vrot.slane %v599_v55, 5  ;;  %v604_v57 = vrot.slane %v599_v55, 6 }
 0x790   :  { %v607_v58 = vadd.f32 %v603_v56, %v2653_v16  ;;  %v608_v60 = vadd.f32 %v604_v57, %v2650_v14 }
 0x792   :  { %2092 = vtanh.f32 %v607_v58  ;;  %v1988_v0 = vmul.f32 -1.442695, %v607_v58  ;;  %v1989_v1 = vmul.f32 -1.442695, %v608_v60 }
 0x793   :  { %2094 = vtanh.f32 %v608_v60 }
 0x794   :  { %2096 = vpow2.f32 %v1988_v0 }
 0x795   :  { %2098 = vpow2.f32 %v1989_v1 }
 0x798   :  { %v2093_v61 = vpop.eup %2092 }
 0x799   :  { %v2095_v63 = vpop.eup %2094  ;;  %659 = vrot.lane.b32.xlu0 %v2093_v61, %s2501_s7 }
 0x79a   :  { %661 = vrot.lane.b32.xlu1 %v2095_v63, %s2501_s7  ;;  %v2097_v3 = vpop.eup %2096 }
 0x79b   :  { %v2099_v5 = vpop.eup %2098  ;;  %v615_v6 = vadd.f32 1.0, %v2097_v3 }
 0x79c   :  { %v616_v8 = vadd.f32 1.0, %v2099_v5 }
 0x79d   :  { %2100 = vrcp.f32 %v615_v6  ;;  %v628_v19 = vand.u32 2147483648, %v615_v6  ;;  %vm622_vm1 = vweird.f32 %v615_v6  ;;  %v626_v21 = vand.u32 2147483647, %v615_v6 }
 0x79e   :  { %2102 = vrcp.f32 %v616_v8  ;;  %v643_v20 = vand.u32 2147483648, %v616_v8  ;;  %vm637_vm2 = vweird.f32 %v616_v8  ;;  %v641_v22 = vand.u32 2147483647, %v616_v8 }
 0x79f   :  { %v629_v25 = vor.u32 1.1754944e-38, %v628_v19  ;;  %vm627_vm5 = vcmp.eq.f32.partialorder %v626_v21, 8.507059e+37 }
 0x7a0   :  { %v644_v26 = vor.u32 1.1754944e-38, %v643_v20  ;;  %vm642_vm6 = vcmp.eq.f32.partialorder %v641_v22, 8.507059e+37 }
 0x7a3   :  { %v2101_v9 = vpop.eup %2100 }
 0x7a4   :  { %v2103_v10 = vpop.eup %2102  ;;  %v618_v11 = vmul.f32 %v2101_v9, %v615_v6  ;;  %vm623_vm14 = vweird.f32 %v2101_v9 }
 0x7a5   :  { %v633_v2 = vmul.f32 %v2103_v10, %v616_v8  ;;  %vm638_vm15 = vweird.f32 %v2103_v10  ;;  %vm624_vm3 = vmor %vm622_vm1, %vm623_vm14 }
 0x7a6   :  { %v619_v4 = vsub.f32 1.0, %v618_v11  ;;  %vm639_vm4 = vmor %vm637_vm2, %vm638_vm15 }
 0x7a7   :  { %v634_v12 = vsub.f32 1.0, %v633_v2 }
 0x7a8   :  { %v620_v13 = vmul.f32 %v2101_v9, %v619_v4 }
 0x7a9   :  { %v635_v15 = vmul.f32 %v2103_v10, %v634_v12 }
 0x7aa   :  { %v621_v17 = vadd.f32 %v2101_v9, %v620_v13 }
 0x7ab   :  { %v636_v18 = vadd.f32 %v2103_v10, %v635_v15 }
 0x7ac   :  { %v625_v23 = vsel %vm624_vm3, %v2101_v9, %v621_v17 }
 0x7ad   :  { %v640_v24 = vsel %vm639_vm4, %v2103_v10, %v636_v18  ;;  %v630_v28 = vsel %vm627_vm5, %v629_v25, %v625_v23 }
 0x7ae   :  { %v645_v30 = vsel %vm642_vm6, %v644_v26, %v640_v24  ;;  %v655_v34 = vmul.f32 %v651_v33, %v630_v28 }
 0x7af   :  { %v656_v39 = vmul.f32 %v652_v38, %v645_v30 }
 0x80b   :  { %v660_v27 = vpop.permute.xlu0 %659 }
 0x80c   :  { %v662_v29 = vpop.permute.xlu1 %661  ;;  %v665_v31 = vmul.f32 %v660_v27, %v630_v28 }
 0x80d   :  { %v666_v32 = vmul.f32 %v662_v29, %v645_v30 }
 0x80e   :  { %669 = vrot.lane.b32.xlu2 %v665_v31, %s2502_s2 }
 0x80f   :  { %671 = vrot.lane.b32.xlu0 %v666_v32, %s2502_s2 }
 0x868   :  { %v670_v35 = vpop.permute.xlu2 %669 }
 0x869   :  { %v2736_v36 = vadd.f32 %v670_v35, %v655_v34 }
 0x86b   :  { %2104 = vtanh.f32 %v2736_v36 }
 0x871   :  { %v2105_v37 = vpop.eup %2104 }
 0x872   :  { %681 = vrot.lane.b32.xlu1 %v2105_v37, %s2503_s27 }
 0x881   :  { %v672_v40 = vpop.permute.xlu0 %671 }
 0x882   :  { %v2741_v44 = vadd.f32 %v672_v40, %v656_v39  ;;  %v776_v39 = vrot.slane %v2736_v36, 7 }
 0x884   :  { %2106 = vtanh.f32 %v2741_v44  ;;  %v777_v33 = vrot.slane %v2741_v44, 7 }
 0x88a   :  { %v2107_v45 = vpop.eup %2106 }
 0x88b   :  { %683 = vrot.lane.b32.xlu2 %v2107_v45, %s2503_s27 }
 0x8e4   :  { %v682_v41 = vpop.permute.xlu1 %681 }
 0x8e5   :  { %v684_v46 = vpop.permute.xlu2 %683  ;;  %v2745_v43 = vmul.f32 %v682_v41, %v630_v28 }
 0x8e6   :  { %v2747_v49 = vmul.f32 %v684_v46, %v645_v30 }
 0x8e7   :  { %v700_v50 = vrot.slane %v2745_v43, 3 }
 0x8e8   :  { %v701_v51 = vrot.slane %v2747_v49, 2 }
 0x8ea   :  { %v702_v42 = vsel %vm328_vm9, %v701_v51, %v700_v50 }
 0x8eb   :  { %703 = vrot.lane.b32.xlu0 %v702_v42, %s2504_s28 }
 0x95d   :  { %v704_v54 = vpop.permute.xlu0 %703 }
 0x95e   :  { %1990 = vmatmul.msk.f32.vlgmr.msrb.gmra.mxu2 %vm212_vm10, %v704_v54 }
 0x9e1   :  { %v724_v55 = vpop.f32.mrf.mxu2 }
 0x9e2   :  { %v728_v56 = vrot.slane %v724_v55, 4  ;;  %v729_v57 = vrot.slane %v724_v55, 5 }
 0x9e4   :  { %v732_v58 = vadd.f32 %v728_v56, %v2653_v16  ;;  %v733_v60 = vadd.f32 %v729_v57, %v2650_v14 }
 0x9e6   :  { %2108 = vtanh.f32 %v732_v58  ;;  %v1992_v0 = vmul.f32 -1.442695, %v733_v60  ;;  %v1991_v6 = vmul.f32 -1.442695, %v732_v58 }
 0x9e7   :  { %2110 = vtanh.f32 %v733_v60 }
 0x9e8   :  { %2112 = vpow2.f32 %v1992_v0 }
 0x9ec   :  { %v2109_v61 = vpop.eup %2108 }
 0x9ed   :  { %v2111_v63 = vpop.eup %2110  ;;  %784 = vrot.lane.b32.xlu1 %v2109_v61, %s2501_s7 }
 0x9ee   :  { %786 = vrot.lane.b32.xlu2 %v2111_v63, %s2501_s7  ;;  %v2113_v1 = vpop.eup %2112 }
 0x9ef   :  { %v741_v3 = vadd.f32 1.0, %v2113_v1 }
 0x9f1   :  { %2114 = vrcp.f32 %v741_v3  ;;  %v768_v12 = vand.u32 2147483648, %v741_v3  ;;  %vm762_vm8 = vweird.f32 %v741_v3  ;;  %v766_v13 = vand.u32 2147483647, %v741_v3 }
 0x9f2   :  { %2116 = vpow2.f32 %v1991_v6 }
 0x9f3   :  { %v769_v17 = vor.u32 1.1754944e-38, %v768_v12  ;;  %vm767_vm12 = vcmp.eq.f32.partialorder %v766_v13, 8.507059e+37 }
 0x9f7   :  { %v2115_v5 = vpop.eup %2114 }
 0x9f8   :  { %v758_v8 = vmul.f32 %v2115_v5, %v741_v3  ;;  %v2117_v10 = vpop.eup %2116  ;;  %vm763_vm7 = vweird.f32 %v2115_v5 }
 0x9f9   :  { %v740_v2 = vadd.f32 1.0, %v2117_v10  ;;  %vm764_vm11 = vmor %vm762_vm8, %vm763_vm7 }
 0x9fa   :  { %v759_v9 = vsub.f32 1.0, %v758_v8 }
 0x9fb   :  { %2118 = vrcp.f32 %v740_v2  ;;  %v753_v26 = vand.u32 2147483648, %v740_v2  ;;  %vm747_vm14 = vweird.f32 %v740_v2  ;;  %v751_v27 = vand.u32 2147483647, %v740_v2 }
 0x9fc   :  { %v760_v11 = vmul.f32 %v2115_v5, %v759_v9 }
 0x9fd   :  { %v754_v29 = vor.u32 1.1754944e-38, %v753_v26  ;;  %vm752_vm1 = vcmp.eq.f32.partialorder %v751_v27, 8.507059e+37 }
 0x9fe   :  { %v761_v4 = vadd.f32 %v2115_v5, %v760_v11 }
 0xa00   :  { %v765_v15 = vsel %vm764_vm11, %v2115_v5, %v761_v4 }
 0xa01   :  { %v770_v19 = vsel %vm767_vm12, %v769_v17, %v765_v15  ;;  %v2119_v20 = vpop.eup %2118 }
 0xa02   :  { %v743_v22 = vmul.f32 %v2119_v20, %v740_v2  ;;  %vm748_vm13 = vweird.f32 %v2119_v20  ;;  %v781_v34 = vmul.f32 %v777_v33, %v770_v19 }
 0xa03   :  { %vm749_vm15 = vmor %vm747_vm14, %vm748_vm13 }
 0xa04   :  { %v744_v23 = vsub.f32 1.0, %v743_v22 }
 0xa06   :  { %v745_v24 = vmul.f32 %v2119_v20, %v744_v23 }
 0xa08   :  { %v746_v25 = vadd.f32 %v2119_v20, %v745_v24 }
 0xa0a   :  { %v750_v28 = vsel %vm749_vm15, %v2119_v20, %v746_v25 }
 0xa0b   :  { %v755_v31 = vsel %vm752_vm1, %v754_v29, %v750_v28 }
 0xa0c   :  { %v780_v40 = vmul.f32 %v776_v39, %v755_v31 }
 0xa48   :  { %v787_v18 = vpop.permute.xlu2 %786 }
 0xa49   :  { %v791_v21 = vmul.f32 %v787_v18, %v770_v19 }
 0xa4b   :  { %796 = vrot.lane.b32.xlu1 %v791_v21, %s2502_s2 }
 0xa5f   :  { %v785_v30 = vpop.permute.xlu1 %784 }
 0xa60   :  { %v790_v32 = vmul.f32 %v785_v30, %v755_v31 }
 0xa62   :  { %794 = vrot.lane.b32.xlu0 %v790_v32, %s2502_s2 }
 0xabd   :  { %v797_v35 = vpop.permute.xlu1 %796 }
 0xabe   :  { %v2761_v37 = vadd.f32 %v797_v35, %v781_v34 }
 0xac0   :  { %2120 = vtanh.f32 %v2761_v37 }
 0xac6   :  { %v2121_v38 = vpop.eup %2120 }
 0xac7   :  { %808 = vrot.lane.b32.xlu0 %v2121_v38, %s2503_s27  ;;  %v902_v38 = vrot.slane %v2761_v37, 7 }
 0xad4   :  { %v795_v45 = vpop.permute.xlu0 %794 }
 0xad5   :  { %v2766_v41 = vadd.f32 %v795_v45, %v780_v40 }
 0xad7   :  { %2122 = vtanh.f32 %v2766_v41  ;;  %v901_v35 = vrot.slane %v2766_v41, 7 }
 0xadd   :  { %v2123_v46 = vpop.eup %2122 }
 0xade   :  { %806 = vrot.lane.b32.xlu2 %v2123_v46, %s2503_s27 }
 0xb38   :  { %v807_v44 = vpop.permute.xlu2 %806 }
 0xb39   :  { %v809_v50 = vpop.permute.xlu0 %808  ;;  %v2770_v51 = vmul.f32 %v807_v44, %v755_v31 }
 0xb3a   :  { %v2772_v42 = vmul.f32 %v809_v50, %v770_v19 }
 0xb3b   :  { %v825_v54 = vrot.slane %v2770_v51, 4 }
 0xb3c   :  { %v826_v55 = vrot.slane %v2772_v42, 3 }
 0xb3e   :  { %v827_v36 = vsel %vm328_vm9, %v826_v55, %v825_v54 }
 0xb3f   :  { %828 = vrot.lane.b32.xlu1 %v827_v36, %s2504_s28 }
 0xbb1   :  { %v829_v56 = vpop.permute.xlu1 %828 }
 0xbb2   :  { %1993 = vmatmul.msk.f32.vlgmr.msra.gmra.mxu3 %vm212_vm10, %v829_v56 }
 0xc35   :  { %v849_v57 = vpop.f32.mrf.mxu3 }
 0xc36   :  { %v853_v58 = vrot.slane %v849_v57, 3  ;;  %v854_v60 = vrot.slane %v849_v57, 4 }
 0xc38   :  { %v857_v61 = vadd.f32 %v853_v58, %v2653_v16  ;;  %v858_v63 = vadd.f32 %v854_v60, %v2650_v14 }
 0xc3a   :  { %2124 = vtanh.f32 %v857_v61  ;;  %v1994_v3 = vmul.f32 -1.442695, %v857_v61  ;;  %v1995_v9 = vmul.f32 -1.442695, %v858_v63 }
 0xc3b   :  { %2126 = vtanh.f32 %v858_v63 }
 0xc3c   :  { %2128 = vpow2.f32 %v1994_v3 }
 0xc40   :  { %v2125_v0 = vpop.eup %2124 }
 0xc41   :  { %v2127_v1 = vpop.eup %2126  ;;  %909 = vrot.lane.b32.xlu2 %v2125_v0, %s2501_s7 }
 0xc42   :  { %911 = vrot.lane.b32.xlu0 %v2127_v1, %s2501_s7  ;;  %v2129_v5 = vpop.eup %2128 }
 0xc43   :  { %v865_v6 = vadd.f32 1.0, %v2129_v5 }
 0xc45   :  { %2130 = vrcp.f32 %v865_v6  ;;  %v878_v15 = vand.u32 2147483648, %v865_v6  ;;  %vm872_vm3 = vweird.f32 %v865_v6  ;;  %v876_v17 = vand.u32 2147483647, %v865_v6 }
 0xc46   :  { %2132 = vpow2.f32 %v1995_v9 }
 0xc47   :  { %v879_v19 = vor.u32 1.1754944e-38, %v878_v15  ;;  %vm877_vm5 = vcmp.eq.f32.partialorder %v876_v17, 8.507059e+37 }
 0xc4b   :  { %v2131_v8 = vpop.eup %2130 }
 0xc4c   :  { %v868_v10 = vmul.f32 %v2131_v8, %v865_v6  ;;  %v2133_v4 = vpop.eup %2132  ;;  %vm873_vm2 = vweird.f32 %v2131_v8 }
 0xc4d   :  { %v866_v12 = vadd.f32 1.0, %v2133_v4  ;;  %vm874_vm4 = vmor %vm872_vm3, %vm873_vm2 }
 0xc4e   :  { %v869_v11 = vsub.f32 1.0, %v868_v10 }
 0xc4f   :  { %2134 = vrcp.f32 %v866_v12  ;;  %v893_v28 = vand.u32 2147483648, %v866_v12  ;;  %vm887_vm7 = vweird.f32 %v866_v12  ;;  %v891_v29 = vand.u32 2147483647, %v866_v12 }
 0xc50   :  { %v870_v2 = vmul.f32 %v2131_v8, %v869_v11 }
 0xc51   :  { %v894_v31 = vor.u32 1.1754944e-38, %v893_v28  ;;  %vm892_vm11 = vcmp.eq.f32.partialorder %v891_v29, 8.507059e+37 }
 0xc52   :  { %v871_v13 = vadd.f32 %v2131_v8, %v870_v2 }
 0xc54   :  { %v875_v18 = vsel %vm874_vm4, %v2131_v8, %v871_v13 }
 0xc55   :  { %v880_v21 = vsel %vm877_vm5, %v879_v19, %v875_v18  ;;  %v2135_v23 = vpop.eup %2134 }
 0xc56   :  { %v883_v24 = vmul.f32 %v2135_v23, %v866_v12  ;;  %vm888_vm6 = vweird.f32 %v2135_v23  ;;  %v905_v39 = vmul.f32 %v901_v35, %v880_v21 }
 0xc57   :  { %vm889_vm8 = vmor %vm887_vm7, %vm888_vm6 }
 0xc58   :  { %v884_v25 = vsub.f32 1.0, %v883_v24 }
 0xc5a   :  { %v885_v26 = vmul.f32 %v2135_v23, %v884_v25 }
 0xc5c   :  { %v886_v27 = vadd.f32 %v2135_v23, %v885_v26 }
 0xc5e   :  { %v890_v30 = vsel %vm889_vm8, %v2135_v23, %v886_v27 }
 0xc5f   :  { %v895_v33 = vsel %vm892_vm11, %v894_v31, %v890_v30 }
 0xc60   :  { %v906_v40 = vmul.f32 %v902_v38, %v895_v33 }
 0xc9b   :  { %v910_v20 = vpop.permute.xlu2 %909 }
 0xc9c   :  { %v915_v22 = vmul.f32 %v910_v20, %v880_v21 }
 0xc9e   :  { %919 = vrot.lane.b32.xlu1 %v915_v22, %s2502_s2 }
 0xcb4   :  { %v912_v32 = vpop.permute.xlu0 %911 }
 0xcb5   :  { %v916_v34 = vmul.f32 %v912_v32, %v895_v33 }
 0xcb7   :  { %921 = vrot.lane.b32.xlu2 %v916_v34, %s2502_s2 }
 0xd10   :  { %v920_v45 = vpop.permute.xlu1 %919 }
 0xd11   :  { %v922_v46 = vpop.permute.xlu2 %921  ;;  %v2787_v44 = vadd.f32 %v920_v45, %v905_v39 }
 0xd12   :  { %v2789_v50 = vadd.f32 %v922_v46, %v906_v40 }
 0xd13   :  { %2136 = vtanh.f32 %v2787_v44  ;;  %v1026_v45 = vrot.slane %v2787_v44, 7 }
 0xd14   :  { %2138 = vtanh.f32 %v2789_v50 }
 0xd19   :  { %v2137_v54 = vpop.eup %2136 }
 0xd1a   :  { %v2139_v55 = vpop.eup %2138  ;;  %931 = vrot.lane.b32.xlu0 %v2137_v54, %s2503_s27 }
 0xd1b   :  { %933 = vrot.lane.b32.xlu1 %v2139_v55, %s2503_s27 }
 0xd8c   :  { %v932_v41 = vpop.permute.xlu0 %931 }
 0xd8d   :  { %v934_v37 = vpop.permute.xlu1 %933  ;;  %v2795_v36 = vmul.f32 %v932_v41, %v880_v21 }
 0xd8e   :  { %v2797_v56 = vmul.f32 %v934_v37, %v895_v33  ;;  %v1027_v37 = vrot.slane %v2789_v50, 7 }
 0xd8f   :  { %v950_v57 = vrot.slane %v2795_v36, 5 }
 0xd90   :  { %v951_v58 = vrot.slane %v2797_v56, 4 }
 0xd92   :  { %v952_v60 = vsel %vm328_vm9, %v951_v58, %v950_v57 }
 0xd93   :  { %953 = vrot.lane.b32.xlu2 %v952_v60, %s2504_s28 }
 0xded   :  { %v954_v61 = vpop.permute.xlu2 %953 }
 0xdee   :  { %1996 = vmatmul.msk.f32.vlgmr.msra.gmra.mxu1 %vm212_vm10, %v954_v61 }
 0xe6b   :  { %v974_v63 = vpop.f32.mrf.mxu1 }
 0xe6c   :  { %v978_v0 = vrot.slane %v974_v63, 2  ;;  %v979_v1 = vrot.slane %v974_v63, 3 }
 0xe6e   :  { %v982_v3 = vadd.f32 %v978_v0, %v2653_v16  ;;  %v983_v5 = vadd.f32 %v979_v1, %v2650_v14 }
 0xe70   :  { %2140 = vtanh.f32 %v982_v3  ;;  %v1997_v9 = vmul.f32 -1.442695, %v982_v3  ;;  %v1998_v10 = vmul.f32 -1.442695, %v983_v5 }
 0xe71   :  { %2142 = vtanh.f32 %v983_v5 }
 0xe72   :  { %2144 = vpow2.f32 %v1997_v9 }
 0xe73   :  { %2146 = vpow2.f32 %v1998_v10 }
 0xe76   :  { %v2141_v6 = vpop.eup %2140 }
 0xe77   :  { %v2143_v8 = vpop.eup %2142  ;;  %1034 = vrot.lane.b32.xlu0 %v2141_v6, %s2501_s7 }
 0xe78   :  { %1036 = vrot.lane.b32.xlu1 %v2143_v8, %s2501_s7  ;;  %v2145_v11 = vpop.eup %2144 }
 0xe79   :  { %v2147_v2 = vpop.eup %2146  ;;  %v990_v4 = vadd.f32 1.0, %v2145_v11 }
 0xe7a   :  { %v991_v12 = vadd.f32 1.0, %v2147_v2 }
 0xe7b   :  { %2148 = vrcp.f32 %v990_v4  ;;  %v1003_v25 = vand.u32 2147483648, %v990_v4  ;;  %vm997_vm14 = vweird.f32 %v990_v4  ;;  %v1001_v27 = vand.u32 2147483647, %v990_v4 }
 0xe7c   :  { %2150 = vrcp.f32 %v991_v12  ;;  %v1018_v26 = vand.u32 2147483648, %v991_v12  ;;  %vm1012_vm15 = vweird.f32 %v991_v12  ;;  %v1016_v28 = vand.u32 2147483647, %v991_v12 }
 0xe7d   :  { %v1004_v31 = vor.u32 1.1754944e-38, %v1003_v25  ;;  %vm1002_vm3 = vcmp.eq.f32.partialorder %v1001_v27, 8.507059e+37 }
 0xe7e   :  { %v1019_v32 = vor.u32 1.1754944e-38, %v1018_v26  ;;  %vm1017_vm4 = vcmp.eq.f32.partialorder %v1016_v28, 8.507059e+37 }
 0xe81   :  { %v2149_v13 = vpop.eup %2148 }
 0xe82   :  { %v2151_v15 = vpop.eup %2150  ;;  %v993_v17 = vmul.f32 %v2149_v13, %v990_v4  ;;  %vm998_vm12 = vweird.f32 %v2149_v13 }
 0xe83   :  { %v1008_v18 = vmul.f32 %v2151_v15, %v991_v12  ;;  %vm1013_vm13 = vweird.f32 %v2151_v15  ;;  %vm999_vm1 = vmor %vm997_vm14, %vm998_vm12 }
 0xe84   :  { %v994_v19 = vsub.f32 1.0, %v993_v17  ;;  %vm1014_vm2 = vmor %vm1012_vm15, %vm1013_vm13  ;;  %vm324_vm15 = vcmask 122880  }
 0xe85   :  { %v1009_v20 = vsub.f32 1.0, %v1008_v18 }
 0xe86   :  { %v995_v21 = vmul.f32 %v2149_v13, %v994_v19 }
 0xe87   :  { %v1010_v22 = vmul.f32 %v2151_v15, %v1009_v20 }
 0xe88   :  { %v996_v23 = vadd.f32 %v2149_v13, %v995_v21 }
 0xe89   :  { %v1011_v24 = vadd.f32 %v2151_v15, %v1010_v22 }
 0xe8a   :  { %v1000_v29 = vsel %vm999_vm1, %v2149_v13, %v996_v23  ;;  %vm697_vm1 = vcmask 125955  }
 0xe8b   :  { %v1015_v30 = vsel %vm1014_vm2, %v2151_v15, %v1011_v24  ;;  %v1005_v34 = vsel %vm1002_vm3, %v1004_v31, %v1000_v29  ;;  %vm1072_vm2 = vcmask 129030   ;;  %vm448_vm3 = vcmask 123905  }
 0xe8c   :  { %v1020_v38 = vsel %vm1017_vm4, %v1019_v32, %v1015_v30  ;;  %v1030_v46 = vmul.f32 %v1026_v45, %v1005_v34  ;;  %vm822_vm4 = vcmask 126980  }
 0xe8d   :  { %v1031_v57 = vmul.f32 %v1027_v37, %v1020_v38 }
 0xee9   :  { %v1035_v33 = vpop.permute.xlu0 %1034 }
 0xeea   :  { %v1037_v35 = vpop.permute.xlu1 %1036  ;;  %v1040_v39 = vmul.f32 %v1035_v33, %v1005_v34 }
 0xeeb   :  { %v1041_v40 = vmul.f32 %v1037_v35, %v1020_v38 }
 0xeec   :  { %1044 = vrot.lane.b32.xlu2 %v1040_v39, %s2502_s2 }
 0xeed   :  { %1046 = vrot.lane.b32.xlu0 %v1041_v40, %s2502_s2 }
 0xf46   :  { %v1045_v54 = vpop.permute.xlu2 %1044 }
 0xf47   :  { %v2811_v55 = vadd.f32 %v1045_v54, %v1030_v46 }
 0xf49   :  { %2152 = vtanh.f32 %v2811_v55 }
 0xf4f   :  { %v2153_v41 = vpop.eup %2152 }
 0xf50   :  { %1056 = vrot.lane.b32.xlu1 %v2153_v41, %s2503_s27 }
 0xf5f   :  { %v1047_v58 = vpop.permute.xlu0 %1046 }
 0xf60   :  { %v2816_v60 = vadd.f32 %v1047_v58, %v1031_v57 }
 0xf62   :  { %2154 = vtanh.f32 %v2816_v60 }
 0xf68   :  { %v2155_v61 = vpop.eup %2154 }
 0xf69   :  { %1058 = vrot.lane.b32.xlu2 %v2155_v61, %s2503_s27 }
 0xfc2   :  { %v1057_v44 = vpop.permute.xlu1 %1056 }
 0xfc3   :  { %v1059_v63 = vpop.permute.xlu2 %1058  ;;  %v2820_v0 = vmul.f32 %v1057_v44, %v1005_v34 }
 0xfc4   :  { %v2822_v1 = vmul.f32 %v1059_v63, %v1020_v38 }
 0xfc5   :  { %v1075_v3 = vrot.slane %v2820_v0, 6 }
 0xfc6   :  { %v1076_v5 = vrot.slane %v2822_v1, 5 }
 0xfc8   :  { %v1077_v50 = vsel %vm328_vm9, %v1076_v5, %v1075_v3 }
 0xfc9   :  { %1078 = vrot.lane.b32.xlu0 %v1077_v50, %s2504_s28 }
0x103b   :  { %v1079_v6 = vpop.permute.xlu0 %1078 }
0x103c   :  { %1999 = vmatmul.msk.f32.vlgmr.msra.gmra.mxu2 %vm212_vm10, %v1079_v6 }
0x10bf   :  { %v1099_v8 = vpop.f32.mrf.mxu2 }
0x10c0   :  { %v1103_v9 = vrot.slane %v1099_v8, 1  ;;  %v1104_v10 = vrot.slane %v1099_v8, 2 }
0x10c2   :  { %v1107_v11 = vadd.f32 %v1103_v9, %v2653_v16  ;;  %v1108_v2 = vadd.f32 %v1104_v10, %v2650_v14  ;;  %v1203_v10 = vld [vmem:[#allocation10 + $0x8] sm:$0xff] }
0x10c3   :  { %1232 = vmatpush.msrb.mxu3 %v1203_v10 }
0x10c4   :  { %2156 = vtanh.f32 %v1107_v11  ;;  %v2001_v13 = vmul.f32 -1.442695, %v1108_v2  ;;  %v2000_v19 = vmul.f32 -1.442695, %v1107_v11  ;;  %v1207_v11 = vld [vmem:[#allocation12 + $0x18] sm:$0xff] }
0x10c5   :  { %2158 = vtanh.f32 %v1108_v2  ;;  %v1206_v2 = vld [vmem:[#allocation12 + $0x10] sm:$0xff]  ;;  %1255 = vmatpush.msra.mxu0 %v1207_v11  ;;  %1292 = vmatpush.msrb.mxu1 %v1207_v11 }
0x10c6   :  { %2160 = vpow2.f32 %v2001_v13  ;;  %1329 = vmatpush.msrb.mxu2 %v1207_v11 }
0x10c7   :  { %1256 = vmatpush.msra.mxu0 %v1206_v2  ;;  %1293 = vmatpush.msrb.mxu1 %v1206_v2 }
0x10c8   :  { %1330 = vmatpush.msrb.mxu2 %v1206_v2 }
0x10ca   :  { %v2157_v4 = vpop.eup %2156 }
0x10cb   :  { %v2159_v12 = vpop.eup %2158  ;;  %1159 = vrot.lane.b32.xlu1 %v2157_v4, %s2501_s7  ;;  %v1205_v4 = vld [vmem:[#allocation12 + $0x8] sm:$0xff] }
0x10cc   :  { %1161 = vrot.lane.b32.xlu2 %v2159_v12, %s2501_s7  ;;  %v2161_v15 = vpop.eup %2160  ;;  %v1204_v12 = vld [vmem:[#allocation12] sm:$0xff]  ;;  %1257 = vmatpush.msra.mxu0 %v1205_v4 }
0x10cd   :  { %v1116_v17 = vadd.f32 1.0, %v2161_v15  ;;  %1294 = vmatpush.msrb.mxu1 %v1205_v4  ;;  %1331 = vmatpush.msrb.mxu2 %v1205_v4 }
0x10ce   :  { %1258 = vmatpush.msra.mxu0 %v1204_v12 }
0x10cf   :  { %2162 = vrcp.f32 %v1116_v17  ;;  %v1143_v24 = vand.u32 2147483648, %v1116_v17  ;;  %vm1137_vm6 = vweird.f32 %v1116_v17  ;;  %v1141_v25 = vand.u32 2147483647, %v1116_v17  ;;  %1295 = vmatpush.msrb.mxu1 %v1204_v12  ;;  %1259 = vmatmul.f32.vlgmr.msra.gmra.mxu0 %v2500_v7 }
0x10d0   :  { %2164 = vpow2.f32 %v2000_v19  ;;  %1332 = vmatpush.msrb.mxu2 %v1204_v12  ;;  %1368 = vmatpush.msrb.mxu0 %v1207_v11 }
0x10d1   :  { %v1144_v27 = vor.u32 1.1754944e-38, %v1143_v24  ;;  %vm1142_vm8 = vcmp.eq.f32.partialorder %v1141_v25, 8.507059e+37  ;;  %1407 = vmatpush.msra.mxu1 %v1207_v11 }
0x10d2   :  { %1446 = vmatpush.msra.mxu2 %v1207_v11  ;;  %1369 = vmatpush.msrb.mxu0 %v1206_v2 }
0x10d3   :  { %1408 = vmatpush.msra.mxu1 %v1206_v2 }
0x10d4   :  { %1447 = vmatpush.msra.mxu2 %v1206_v2  ;;  %1370 = vmatpush.msrb.mxu0 %v1205_v4 }
0x10d5   :  { %v2163_v18 = vpop.eup %2162  ;;  %1409 = vmatpush.msra.mxu1 %v1205_v4 }
0x10d6   :  { %v1133_v20 = vmul.f32 %v2163_v18, %v1116_v17  ;;  %v2165_v21 = vpop.eup %2164  ;;  %vm1138_vm5 = vweird.f32 %v2163_v18  ;;  %1448 = vmatpush.msra.mxu2 %v1205_v4  ;;  %1371 = vmatpush.msrb.mxu0 %v1204_v12 }
0x10d7   :  { %v1115_v22 = vadd.f32 1.0, %v2165_v21  ;;  %vm1139_vm7 = vmor %vm1137_vm6, %vm1138_vm5  ;;  %vm572_vm5 = vcmask 124930   ;;  %vm947_vm6 = vcmask 128005   ;;  %1410 = vmatpush.msra.mxu1 %v1204_v12 }
0x10d8   :  { %v1134_v16 = vsub.f32 1.0, %v1133_v20  ;;  %1449 = vmatpush.msra.mxu2 %v1204_v12  ;;  %1524 = vmatpush.msra.mxu0 %v1207_v11  ;;  %v2041_v20 = vld [vmem:[%s3026_s6] ss:$0 sm:$0xff] }
0x10d9   :  { %2166 = vrcp.f32 %v1115_v22  ;;  %v1128_v38 = vand.u32 2147483648, %v1115_v22  ;;  %vm1122_vm12 = vweird.f32 %v1115_v22  ;;  %v1126_v39 = vand.u32 2147483647, %v1115_v22 }
0x10da   :  { %v1135_v14 = vmul.f32 %v2163_v18, %v1134_v16  ;;  %1525 = vmatpush.msra.mxu0 %v1206_v2 }
0x10db   :  { %v1129_v45 = vor.u32 1.1754944e-38, %v1128_v38  ;;  %vm1127_vm14 = vcmp.eq.f32.partialorder %v1126_v39, 8.507059e+37 }
0x10dc   :  { %v1136_v23 = vadd.f32 %v2163_v18, %v1135_v14  ;;  %1526 = vmatpush.msra.mxu0 %v1205_v4 }
0x10de   :  { %v1140_v26 = vsel %vm1139_vm7, %v2163_v18, %v1136_v23  ;;  %vm1197_vm7 = vcmask 130055   ;;  %1527 = vmatpush.msra.mxu0 %v1204_v12 }
0x10df   :  { %v2833_v29 = vsel %vm1142_vm8, %v1144_v27, %v1140_v26  ;;  %v2167_v30 = vpop.eup %2166  ;;  %vm1271_vm8 = vcmask 253952  }
0x10e0   :  { %v1118_v32 = vmul.f32 %v2167_v30, %v1115_v22  ;;  %vm1123_vm11 = vweird.f32 %v2167_v30 }
0x10e1   :  { %vm1124_vm13 = vmor %vm1122_vm12, %vm1123_vm11  ;;  %vm1346_vm11 = vcmask 256002   ;;  %vm1385_vm12 = vcmask 257027  }
0x10e2   :  { %v1119_v33 = vsub.f32 1.0, %v1118_v32 }
0x10e4   :  { %v1120_v34 = vmul.f32 %v2167_v30, %v1119_v33 }
0x10e6   :  { %v1121_v35 = vadd.f32 %v2167_v30, %v1120_v34 }
0x10e8   :  { %v1125_v40 = vsel %vm1124_vm13, %v2167_v30, %v1121_v35  ;;  %vm1424_vm13 = vcmask 258052  }
0x10e9   :  { %v1130_v54 = vsel %vm1127_vm14, %v1129_v45, %v1125_v40  ;;  %vm1463_vm14 = vcmask 259077  }
0x1126   :  { %v1162_v28 = vpop.permute.xlu2 %1161 }
0x1127   :  { %v1166_v31 = vmul.f32 %v1162_v28, %v2833_v29 }
0x1129   :  { %1171 = vrot.lane.b32.xlu1 %v1166_v31, %s2502_s2 }
0x1131   :  { %318 = vrot.lane.b32.xlu1 %v2671_v62, %s2504_s28  ;;  %v1152_v62 = vrot.slane %v2816_v60, 7 }
0x1139   :  { %691 = vrot.lane.b32.xlu1 %v2745_v43, %s2504_s28  ;;  %v1156_v43 = vmul.f32 %v1152_v62, %v2833_v29 }
0x113d   :  { %v1160_v46 = vpop.permute.xlu1 %1159 }
0x113e   :  { %v1165_v41 = vmul.f32 %v1160_v46, %v1130_v54 }
0x1140   :  { %1169 = vrot.lane.b32.xlu0 %v1165_v41, %s2502_s2 }
0x1141   :  { %1066 = vrot.lane.b32.xlu1 %v2820_v0, %s2504_s28 }
0x1149   :  { %444 = vrot.lane.b32.xlu1 %v2697_v53, %s2504_s28  ;;  %v1151_v53 = vrot.slane %v2811_v55, 7 }
0x114c   :  { %v1260_v21 = vpop.f32.mrf.mxu0 }
0x114d   :  { %v1264_v24 = vrot.slane %v1260_v21, 1 }
0x1151   :  { %818 = vrot.lane.b32.xlu1 %v2772_v42, %s2504_s28  ;;  %v1155_v42 = vmul.f32 %v1151_v53, %v1130_v54 }
0x119b   :  { %v1172_v37 = vpop.permute.xlu1 %1171 }
0x119c   :  { %v1176_v57 = vadd.f32 %v1172_v37, %v1156_v43 }
0x119e   :  { %2168 = vtanh.f32 %v1176_v57 }
0x11a3   :  { %v319_v58 = vpop.permute.xlu1 %318 }
0x11a4   :  { %v2169_v61 = vpop.eup %2168  ;;  %325 = vst.msk [vmem:[#allocation2] sm:$0x1] %vm324_vm15, %v319_v58 }
0x11a5   :  { %1183 = vrot.lane.b32.xlu0 %v2169_v61, %s2503_s27 }
0x11ab   :  { %v692_v44 = vpop.permute.xlu1 %691 }
0x11ac   :  { %698 = vst.msk [vmem:[#allocation2] sm:$0x8] %vm697_vm1, %v692_v44 }
0x11ad   :  { %566 = vrot.lane.b32.xlu0 %v2720_v47, %s2504_s28 }
0x11b2   :  { %v1170_v60 = vpop.permute.xlu0 %1169 }
0x11b3   :  { %v1067_v63 = vpop.permute.xlu1 %1066  ;;  %v1175_v0 = vadd.f32 %v1170_v60, %v1155_v42 }
0x11b4   :  { %1073 = vst.msk [vmem:[#allocation2] sm:$0x40] %vm1072_vm2, %v1067_v63 }
0x11b5   :  { %2170 = vtanh.f32 %v1175_v0  ;;  %941 = vrot.lane.b32.xlu0 %v2795_v36, %s2504_s28 }
0x11bb   :  { %v2171_v3 = vpop.eup %2170  ;;  %v445_v5 = vpop.permute.xlu1 %444 }
0x11bc   :  { %450 = vst.msk [vmem:[#allocation2 + $0x8] sm:$0x2] %vm448_vm3, %v445_v5  ;;  %1181 = vrot.lane.b32.xlu2 %v2171_v3, %s2503_s27 }
0x11bd   :  { %320 = vrot.lane.b32.xlu0 %v2668_v59, %s2504_s28 }
0x11c3   :  { %v819_v47 = vpop.permute.xlu1 %818 }
0x11c4   :  { %824 = vst.msk [vmem:[#allocation2 + $0x8] sm:$0x10] %vm822_vm4, %v819_v47  ;;  %442 = vrot.lane.b32.xlu2 %v2695_v52, %s2504_s28 }
0x11c5   :  { %693 = vrot.lane.b32.xlu0 %v2747_v49, %s2504_s28 }
0x11cc   :  { %816 = vrot.lane.b32.xlu2 %v2770_v51, %s2504_s28 }
0x11cd   :  { %1068 = vrot.lane.b32.xlu0 %v2822_v1, %s2504_s28 }
0x11d4   :  { %568 = vrot.lane.b32.xlu2 %v2722_v48, %s2504_s28 }
0x1216   :  { %v1182_v59 = vpop.permute.xlu2 %1181 }
0x1217   :  { %v1184_v36 = vpop.permute.xlu0 %1183  ;;  %v1187_v55 = vmul.f32 %v1182_v59, %v1130_v54 }
0x1218   :  { %v1188_v50 = vmul.f32 %v1184_v36, %v2833_v29 }
0x1219   :  { %1191 = vrot.lane.b32.xlu2 %v1187_v55, %s2504_s28 }
0x121a   :  { %1193 = vrot.lane.b32.xlu1 %v1188_v50, %s2504_s28 }
0x121e   :  { %v443_v52 = vpop.permute.xlu2 %442 }
0x121f   :  { %v567_v49 = vpop.permute.xlu0 %566  ;;  %449 = vst.msk [vmem:[#allocation2] sm:$0x2] %vm448_vm3, %v443_v52 }
0x1220   :  { %573 = vst.msk [vmem:[#allocation2] sm:$0x4] %vm572_vm5, %v567_v49 }
0x1221   :  { %943 = vrot.lane.b32.xlu2 %v2797_v56, %s2504_s28  ;;  %v1202_v56 = vld [vmem:[#allocation10] sm:$0xff] }
0x1222   :  { %1233 = vmatpush.msrb.mxu3 %v1202_v56 }
0x1224   :  { %1485 = vmatpush.msra.mxu3 %v1207_v11 }
0x1226   :  { %v817_v48 = vpop.permute.xlu2 %816  ;;  %1486 = vmatpush.msra.mxu3 %v1206_v2 }
0x1227   :  { %v942_v51 = vpop.permute.xlu0 %941  ;;  %823 = vst.msk [vmem:[#allocation2] sm:$0x10] %vm822_vm4, %v817_v48 }
0x1228   :  { %948 = vst.msk [vmem:[#allocation2] sm:$0x20] %vm947_vm6, %v942_v51  ;;  %1487 = vmatpush.msra.mxu3 %v1205_v4 }
0x122a   :  { %1488 = vmatpush.msra.mxu3 %v1204_v12 }
0x122e   :  { %v569_v1 = vpop.permute.xlu2 %568 }
0x122f   :  { %v321_v6 = vpop.permute.xlu0 %320  ;;  %574 = vst.msk [vmem:[#allocation2 + $0x8] sm:$0x4] %vm572_vm5, %v569_v1 }
0x1230   :  { %326 = vst.msk [vmem:[#allocation2 + $0x8] sm:$0x1] %vm324_vm15, %v321_v6  ;;  %vm1502_vm15 = vcmask 260102  }
0x1237   :  { %v694_v8 = vpop.permute.xlu0 %693 }
0x1238   :  { %699 = vst.msk [vmem:[#allocation2 + $0x8] sm:$0x8] %vm697_vm1, %v694_v8  ;;  %vm1541_vm1 = vcmask 261127  }
0x123f   :  { %v1069_v9 = vpop.permute.xlu0 %1068 }
0x1240   :  { %1074 = vst.msk [vmem:[#allocation2 + $0x8] sm:$0x40] %vm1072_vm2, %v1069_v9 }
0x1273   :  { %v1192_v13 = vpop.permute.xlu2 %1191 }
0x1274   :  { %1198 = vst.msk [vmem:[#allocation2] sm:$0x80] %vm1197_vm7, %v1192_v13 }
0x127b   :  { %v944_v15 = vpop.permute.xlu2 %943  ;;  %v1200_v17 = vld [vmem:[#allocation2] sm:$0xff] }
0x127c   :  { %949 = vst.msk [vmem:[#allocation2 + $0x8] sm:$0x20] %vm947_vm6, %v944_v15  ;;  %2002 = vmatmul.msk.f32.vlgmr.msrb.gmra.mxu3 %vm212_vm10, %v1200_v17 }
0x128c   :  { %v1194_v18 = vpop.permute.xlu1 %1193 }
0x128d   :  { %1199 = vst.msk [vmem:[#allocation2 + $0x8] sm:$0x80] %vm1197_vm7, %v1194_v18 }
0x1294   :  { %v1201_v19 = vld [vmem:[#allocation2 + $0x8] sm:$0xff] }
0x1295   :  { %2003 = vmatmul.msk.f32.gmra.mxu3 %vm212_vm10, %v1201_v19  ;;  %vm1308_vm10 = vcmask 254977  }
0x12ff   :  { %v1235_v16 = vpop.f32.mrf.mxu3 }
0x1300   :  { %v2892_v14 = vadd.f32 %v2041_v20, %v1235_v16 }
0x1302   :  { %v1267_v22 = vadd.f32 %v1260_v21, %v2892_v14 }
0x1304   :  { %2172 = vtanh.f32 %v1267_v22 }
0x130a   :  { %v2173_v23 = vpop.eup %2172 }
0x130b   :  { %1272 = vst.msk [vmem:[#allocation3] sm:$0x1] %vm1271_vm8, %v2173_v23 }
0x1318   :  { %v1238_v25 = vpop.f32.mrf.mxu3 }
0x1319   :  { %v2896_v26 = vadd.f32 %v2041_v20, %v1238_v25 }
0x131b   :  { %v1268_v27 = vadd.f32 %v1264_v24, %v2896_v26 }
0x131d   :  { %2174 = vtanh.f32 %v1268_v27 }
0x1323   :  { %v2175_v28 = vpop.eup %2174 }
0x1324   :  { %1273 = vst.msk [vmem:[#allocation3 + $0x8] sm:$0x1] %vm1271_vm8, %v2175_v28  ;;  %v1276_v29 = vrot.slane %v2175_v28, 7  ;;  %v1560_v28 = vld [vmem:[#allocation15 + $0x18] sm:$0xff] }
0x1325   :  { %1642 = vmatpush.msrb.mxu3 %v1560_v28 }
0x1326   :  { %v1277_v30 = vsel %vm328_vm9, %v1276_v29, %v2173_v23  ;;  %v1559_v29 = vld [vmem:[#allocation15 + $0x10] sm:$0xff] }
0x1327   :  { %2004 = vmatmul.msk.f32.vlgmr.msrb.gmra.mxu1 %vm180_vm0, %v1277_v30  ;;  %1643 = vmatpush.msrb.mxu3 %v1559_v29  ;;  %v1556_v30 = vld [vmem:[#allocation13 + $0x18] sm:$0xff] }
0x1328   :  { %1583 = vmatpush.msrb.mxu1 %v1556_v30 }
0x13a4   :  { %v1297_v31 = vpop.f32.mrf.mxu1 }
0x13a5   :  { %v1301_v32 = vrot.slane %v1297_v31, 7  ;;  %v1305_v33 = vadd.f32 %v1297_v31, %v2896_v26  ;;  %v1558_v31 = vld [vmem:[#allocation15 + $0x8] sm:$0xff] }
0x13a6   :  { %1644 = vmatpush.msrb.mxu3 %v1558_v31 }
0x13a7   :  { %v1304_v34 = vadd.f32 %v1301_v32, %v2892_v14  ;;  %2176 = vtanh.f32 %v1305_v33  ;;  %v1555_v32 = vld [vmem:[#allocation13 + $0x10] sm:$0xff]  ;;  %v1557_v33 = vld [vmem:[#allocation15] sm:$0xff] }
0x13a8   :  { %1584 = vmatpush.msrb.mxu1 %v1555_v32  ;;  %1645 = vmatpush.msrb.mxu3 %v1557_v33 }
0x13a9   :  { %2178 = vtanh.f32 %v1304_v34  ;;  %v1554_v34 = vld [vmem:[#allocation13 + $0x8] sm:$0xff] }
0x13aa   :  { %1585 = vmatpush.msrb.mxu1 %v1554_v34 }
0x13ad   :  { %v2177_v35 = vpop.eup %2176 }
0x13ae   :  { %1310 = vst.msk [vmem:[#allocation3 + $0x8] sm:$0x2] %vm1308_vm10, %v2177_v35 }
0x13af   :  { %v2179_v38 = vpop.eup %2178 }
0x13b0   :  { %1309 = vst.msk [vmem:[#allocation3] sm:$0x2] %vm1308_vm10, %v2179_v38  ;;  %v1313_v39 = vrot.slane %v2179_v38, 1 }
0x13b2   :  { %v1314_v40 = vsel %vm328_vm9, %v2177_v35, %v1313_v39  ;;  %v1553_v35 = vld [vmem:[#allocation13] sm:$0xff] }
0x13b3   :  { %2005 = vmatmul.msk.f32.vlgmr.msrb.gmra.mxu2 %vm180_vm0, %v1314_v40  ;;  %1586 = vmatpush.msrb.mxu1 %v1553_v35 }
0x13b4   :  { %1606 = vmatpush.msrb.mxu2 %v1560_v28 }
0x13b6   :  { %1607 = vmatpush.msrb.mxu2 %v1559_v29 }
0x13b8   :  { %1608 = vmatpush.msrb.mxu2 %v1558_v31 }
0x13ba   :  { %1609 = vmatpush.msrb.mxu2 %v1557_v33 }
0x1436   :  { %v1334_v45 = vpop.f32.mrf.mxu2 }
0x1437   :  { %v1338_v46 = vrot.slane %v1334_v45, 6  ;;  %v1339_v54 = vrot.slane %v1334_v45, 7 }
0x1439   :  { %v1342_v41 = vadd.f32 %v1338_v46, %v2892_v14  ;;  %v1343_v62 = vadd.f32 %v1339_v54, %v2896_v26 }
0x143b   :  { %2180 = vtanh.f32 %v1342_v41 }
0x143c   :  { %2182 = vtanh.f32 %v1343_v62 }
0x1441   :  { %v2181_v43 = vpop.eup %2180 }
0x1442   :  { %v2183_v37 = vpop.eup %2182  ;;  %1347 = vst.msk [vmem:[#allocation3] sm:$0x4] %vm1346_vm11, %v2181_v43  ;;  %v1351_v57 = vrot.slane %v2181_v43, 2 }
0x1443   :  { %1348 = vst.msk [vmem:[#allocation3 + $0x8] sm:$0x4] %vm1346_vm11, %v2183_v37  ;;  %v1352_v58 = vrot.slane %v2183_v37, 1 }
0x1445   :  { %v1353_v61 = vsel %vm328_vm9, %v1352_v58, %v1351_v57 }
0x1446   :  { %2006 = vmatmul.msk.f32.vlgmr.msrb.gmra.mxu0 %vm180_vm0, %v1353_v61 }
0x1447   :  { %1678 = vmatpush.msrb.mxu0 %v1560_v28 }
0x1449   :  { %1679 = vmatpush.msrb.mxu0 %v1559_v29 }
0x144b   :  { %1680 = vmatpush.msrb.mxu0 %v1558_v31 }
0x144d   :  { %1681 = vmatpush.msrb.mxu0 %v1557_v33 }
0x14c3   :  { %v1373_v44 = vpop.f32.mrf.mxu0 }
0x14c4   :  { %v1377_v53 = vrot.slane %v1373_v44, 5  ;;  %v1378_v42 = vrot.slane %v1373_v44, 6 }
0x14c6   :  { %v1381_v60 = vadd.f32 %v1377_v53, %v2892_v14  ;;  %v1382_v63 = vadd.f32 %v1378_v42, %v2896_v26 }
0x14c8   :  { %2184 = vtanh.f32 %v1381_v60 }
0x14c9   :  { %2186 = vtanh.f32 %v1382_v63 }
0x14ce   :  { %v2185_v0 = vpop.eup %2184 }
0x14cf   :  { %v2187_v3 = vpop.eup %2186  ;;  %1386 = vst.msk [vmem:[#allocation3] sm:$0x8] %vm1385_vm12, %v2185_v0  ;;  %v1390_v5 = vrot.slane %v2185_v0, 3 }
0x14d0   :  { %1387 = vst.msk [vmem:[#allocation3 + $0x8] sm:$0x8] %vm1385_vm12, %v2187_v3  ;;  %v1391_v47 = vrot.slane %v2187_v3, 2 }
0x14d2   :  { %v1392_v59 = vsel %vm328_vm9, %v1391_v47, %v1390_v5 }
0x14d3   :  { %2007 = vmatmul.msk.f32.vlgmr.msra.gmra.mxu1 %vm180_vm0, %v1392_v59 }
0x14d4   :  { %1830 = vmatpush.msra.mxu1 %v1560_v28 }
0x14d6   :  { %1831 = vmatpush.msra.mxu1 %v1559_v29 }
0x14d8   :  { %1832 = vmatpush.msra.mxu1 %v1558_v31 }
0x14da   :  { %1833 = vmatpush.msra.mxu1 %v1557_v33 }
0x1550   :  { %v1412_v36 = vpop.f32.mrf.mxu1 }
0x1551   :  { %v1416_v55 = vrot.slane %v1412_v36, 4  ;;  %v1417_v50 = vrot.slane %v1412_v36, 5 }
0x1553   :  { %v1420_v52 = vadd.f32 %v1416_v55, %v2892_v14  ;;  %v1421_v49 = vadd.f32 %v1417_v50, %v2896_v26 }
0x1555   :  { %2188 = vtanh.f32 %v1420_v52 }
0x1556   :  { %2190 = vtanh.f32 %v1421_v49 }
0x155b   :  { %v2189_v48 = vpop.eup %2188 }
0x155c   :  { %v2191_v51 = vpop.eup %2190  ;;  %1425 = vst.msk [vmem:[#allocation3] sm:$0x10] %vm1424_vm13, %v2189_v48  ;;  %v1429_v1 = vrot.slane %v2189_v48, 4 }
0x155d   :  { %1426 = vst.msk [vmem:[#allocation3 + $0x8] sm:$0x10] %vm1424_vm13, %v2191_v51  ;;  %v1430_v6 = vrot.slane %v2191_v51, 3 }
0x155f   :  { %v1431_v8 = vsel %vm328_vm9, %v1430_v6, %v1429_v1 }
0x1560   :  { %2008 = vmatmul.msk.f32.vlgmr.msra.gmra.mxu2 %vm180_vm0, %v1431_v8 }
0x1561   :  { %1716 = vmatpush.msra.mxu2 %v1560_v28 }
0x1563   :  { %1717 = vmatpush.msra.mxu2 %v1559_v29 }
0x1565   :  { %1718 = vmatpush.msra.mxu2 %v1558_v31 }
0x1567   :  { %1719 = vmatpush.msra.mxu2 %v1557_v33 }
0x1568   :  { %1610 = vmatmul.f32.vlgmr.msrb.gmra.mxu2 %v2500_v7 }
0x1569   :  { %1868 = vmatpush.msrb.mxu2 %v1560_v28 }
0x156b   :  { %1869 = vmatpush.msrb.mxu2 %v1559_v29 }
0x156d   :  { %1870 = vmatpush.msrb.mxu2 %v1558_v31 }
0x156f   :  { %1871 = vmatpush.msrb.mxu2 %v1557_v33 }
0x15e3   :  { %v1451_v9 = vpop.f32.mrf.mxu2 }
0x15e4   :  { %v1455_v10 = vrot.slane %v1451_v9, 3  ;;  %v1456_v56 = vrot.slane %v1451_v9, 4 }
0x15e6   :  { %v1459_v11 = vadd.f32 %v1455_v10, %v2892_v14  ;;  %v1460_v2 = vadd.f32 %v1456_v56, %v2896_v26 }
0x15e8   :  { %2192 = vtanh.f32 %v1459_v11 }
0x15e9   :  { %2194 = vtanh.f32 %v1460_v2 }
0x15eb   :  { %v1611_v37 = vpop.f32.mrf.mxu2 }
0x15ec   :  { %v1615_v61 = vrot.slane %v1611_v37, 1 }
0x15ee   :  { %v2193_v4 = vpop.eup %2192 }
0x15ef   :  { %v2195_v12 = vpop.eup %2194  ;;  %1464 = vst.msk [vmem:[#allocation3] sm:$0x20] %vm1463_vm14, %v2193_v4  ;;  %v1468_v13 = vrot.slane %v2193_v4, 5 }
0x15f0   :  { %1465 = vst.msk [vmem:[#allocation3 + $0x8] sm:$0x20] %vm1463_vm14, %v2195_v12  ;;  %v1469_v15 = vrot.slane %v2195_v12, 4 }
0x15f2   :  { %v1470_v17 = vsel %vm328_vm9, %v1469_v15, %v1468_v13 }
0x15f3   :  { %2009 = vmatmul.msk.f32.vlgmr.msra.gmra.mxu3 %vm180_vm0, %v1470_v17 }
0x15f4   :  { %1754 = vmatpush.msra.mxu3 %v1560_v28 }
0x15f6   :  { %1755 = vmatpush.msra.mxu3 %v1559_v29 }
0x15f8   :  { %1756 = vmatpush.msra.mxu3 %v1558_v31 }
0x15fa   :  { %1757 = vmatpush.msra.mxu3 %v1557_v33 }
0x1676   :  { %v1490_v18 = vpop.f32.mrf.mxu3 }
0x1677   :  { %v1494_v19 = vrot.slane %v1490_v18, 2  ;;  %v1495_v20 = vrot.slane %v1490_v18, 3 }
0x1679   :  { %v1498_v16 = vadd.f32 %v1494_v19, %v2892_v14  ;;  %v1499_v21 = vadd.f32 %v1495_v20, %v2896_v26 }
0x167b   :  { %2196 = vtanh.f32 %v1498_v16 }
0x167c   :  { %2198 = vtanh.f32 %v1499_v21 }
0x1681   :  { %v2197_v22 = vpop.eup %2196 }
0x1682   :  { %v2199_v23 = vpop.eup %2198  ;;  %1503 = vst.msk [vmem:[#allocation3] sm:$0x40] %vm1502_vm15, %v2197_v22  ;;  %v1507_v24 = vrot.slane %v2197_v22, 6 }
0x1683   :  { %1504 = vst.msk [vmem:[#allocation3 + $0x8] sm:$0x40] %vm1502_vm15, %v2199_v23  ;;  %v1508_v25 = vrot.slane %v2199_v23, 5 }
0x1685   :  { %v1509_v27 = vsel %vm328_vm9, %v1508_v25, %v1507_v24 }
0x1686   :  { %2010 = vmatmul.msk.f32.vlgmr.msra.gmra.mxu0 %vm180_vm0, %v1509_v27 }
0x1687   :  { %1792 = vmatpush.msra.mxu0 %v1560_v28 }
0x1689   :  { %1793 = vmatpush.msra.mxu0 %v1559_v29 }
0x168b   :  { %1794 = vmatpush.msra.mxu0 %v1558_v31 }
0x168d   :  { %1795 = vmatpush.msra.mxu0 %v1557_v33 }
0x1703   :  { %v1529_v7 = vpop.f32.mrf.mxu0 }
0x1704   :  { %v1533_v38 = vrot.slane %v1529_v7, 1  ;;  %v1534_v39 = vrot.slane %v1529_v7, 2 }
0x1706   :  { %v1537_v40 = vadd.f32 %v1533_v38, %v2892_v14  ;;  %v1538_v45 = vadd.f32 %v1534_v39, %v2896_v26  ;;  %v2042_v26 = vld [vmem:[%s3029_s9] ss:$0 sm:$0xff]  ;;  %s2505_s9 = smov [#allocation19]  }
0x1707   :  { %s1953_s14 = sshll.u32 %s2505_s9, 4  ;;  %s1954_s14 = int_to_ptr.vmem [resolvable:$true] %s1953_s14 }
0x1708   :  { %2200 = vtanh.f32 %v1537_v40 }
0x1709   :  { %2202 = vtanh.f32 %v1538_v45 }
0x170e   :  { %v2201_v46 = vpop.eup %2200 }
0x170f   :  { %v2203_v54 = vpop.eup %2202  ;;  %1542 = vst.msk [vmem:[#allocation3] sm:$0x80] %vm1541_vm1, %v2201_v46 }
0x1710   :  { %1543 = vst.msk [vmem:[#allocation3 + $0x8] sm:$0x80] %vm1541_vm1, %v2203_v54  ;;  %v1546_v41 = vrot.slane %v2203_v54, 7 }
0x1711   :  { %1549 = vst.msk [vmem:[#allocation19 - $0x7] sm:$0x80] %vm1541_vm1, %v2201_v46 }
0x1712   :  { %1550 = vst.msk [vmem:[#allocation19 + $0x1] sm:$0x1] %vm1271_vm8, %v1546_v41 }
0x1716   :  { %v1551_v62 = vld [vmem:[#allocation3] sm:$0xff] }
0x1717   :  { %2011 = vmatmul.msk.f32.vlgmr.msrb.gmra.mxu1 %vm180_vm0, %v1551_v62  ;;  %v1552_v14 = vld [vmem:[#allocation3 + $0x8] sm:$0xff] }
0x171f   :  { %2012 = vmatmul.msk.f32.gmra.mxu1 %vm180_vm0, %v1552_v14 }
0x1794   :  { %v1588_v43 = vpop.f32.mrf.mxu1 }
0x1795   :  { %v2950_v57 = vadd.f32 %v2042_v26, %v1588_v43 }
0x1797   :  { %v1618_v58 = vadd.f32 %v1611_v37, %v2950_v57 }
0x1799   :  { %2204 = vtanh.f32 %v1618_v58 }
0x179c   :  { %v1591_v44 = vpop.f32.mrf.mxu1 }
0x179d   :  { %v2953_v53 = vadd.f32 %v2042_v26, %v1591_v44 }
0x179f   :  { %v2205_v42 = vpop.eup %2204  ;;  %v1619_v60 = vadd.f32 %v1615_v61, %v2953_v53 }
0x17a0   :  { %1622 = vst.msk [vmem:[#allocation3] sm:$0x1] %vm1271_vm8, %v2205_v42 }
0x17a1   :  { %2206 = vtanh.f32 %v1619_v60  ;;  %v1900_v60 = vld [vmem:[#allocation16 + $0x18] sm:$0xff] }
0x17a7   :  { %v2207_v63 = vpop.eup %2206 }
0x17a8   :  { %v1626_v0 = vrot.slane %v2207_v63, 7  ;;  %1623 = vst.msk [vmem:[#allocation3 + $0x8] sm:$0x1] %vm1271_vm8, %v2207_v63  ;;  %v1899_v63 = vld [vmem:[#allocation16 + $0x10] sm:$0xff] }
0x17aa   :  { %v1627_v3 = vsel %vm328_vm9, %v1626_v0, %v2205_v42  ;;  %v1898_v0 = vld [vmem:[#allocation16 + $0x8] sm:$0xff] }
0x17ab   :  { %2013 = vmatmul.msk.f32.vlgmr.msrb.gmra.mxu3 %vm180_vm0, %v1627_v3  ;;  %v1897_v3 = vld [vmem:[#allocation16] sm:$0xff] }
0x17ac   :  { %1923 = vmatpush.msrb.mxu3 %v1900_v60 }
0x17ae   :  { %1924 = vmatpush.msrb.mxu3 %v1899_v63 }
0x17b0   :  { %1925 = vmatpush.msrb.mxu3 %v1898_v0 }
0x17b2   :  { %1926 = vmatpush.msrb.mxu3 %v1897_v3 }
0x182e   :  { %v1647_v5 = vpop.f32.mrf.mxu3 }
0x182f   :  { %v1651_v47 = vrot.slane %v1647_v5, 7  ;;  %v1655_v59 = vadd.f32 %v1647_v5, %v2953_v53 }
0x1831   :  { %v1654_v36 = vadd.f32 %v1651_v47, %v2950_v57  ;;  %2208 = vtanh.f32 %v1655_v59 }
0x1833   :  { %2210 = vtanh.f32 %v1654_v36 }
0x1837   :  { %v2209_v55 = vpop.eup %2208 }
0x1838   :  { %1659 = vst.msk [vmem:[#allocation3 + $0x8] sm:$0x2] %vm1308_vm10, %v2209_v55 }
0x1839   :  { %v2211_v50 = vpop.eup %2210 }
0x183a   :  { %1658 = vst.msk [vmem:[#allocation3] sm:$0x2] %vm1308_vm10, %v2211_v50  ;;  %v1662_v52 = vrot.slane %v2211_v50, 1 }
0x183c   :  { %v1663_v49 = vsel %vm328_vm9, %v2209_v55, %v1662_v52 }
0x183d   :  { %2014 = vmatmul.msk.f32.vlgmr.msrb.gmra.mxu0 %vm180_vm0, %v1663_v49 }
0x18ba   :  { %v1683_v48 = vpop.f32.mrf.mxu0 }
0x18bb   :  { %v1687_v51 = vrot.slane %v1683_v48, 6  ;;  %v1688_v1 = vrot.slane %v1683_v48, 7 }
0x18bd   :  { %v1691_v6 = vadd.f32 %v1687_v51, %v2950_v57  ;;  %v1692_v8 = vadd.f32 %v1688_v1, %v2953_v53 }
0x18bf   :  { %2212 = vtanh.f32 %v1691_v6 }
0x18c0   :  { %2214 = vtanh.f32 %v1692_v8 }
0x18c5   :  { %v2213_v9 = vpop.eup %2212 }
0x18c6   :  { %v2215_v10 = vpop.eup %2214  ;;  %1695 = vst.msk [vmem:[#allocation3] sm:$0x4] %vm1346_vm11, %v2213_v9  ;;  %v1699_v56 = vrot.slane %v2213_v9, 2 }
0x18c7   :  { %1696 = vst.msk [vmem:[#allocation3 + $0x8] sm:$0x4] %vm1346_vm11, %v2215_v10  ;;  %v1700_v11 = vrot.slane %v2215_v10, 1 }
0x18c9   :  { %v1701_v2 = vsel %vm328_vm9, %v1700_v11, %v1699_v56 }
0x18ca   :  { %2015 = vmatmul.msk.f32.vlgmr.msra.gmra.mxu2 %vm180_vm0, %v1701_v2 }
0x194d   :  { %v1721_v4 = vpop.f32.mrf.mxu2 }
0x194e   :  { %v1725_v12 = vrot.slane %v1721_v4, 5  ;;  %v1726_v13 = vrot.slane %v1721_v4, 6 }
0x1950   :  { %v1729_v15 = vadd.f32 %v1725_v12, %v2950_v57  ;;  %v1730_v17 = vadd.f32 %v1726_v13, %v2953_v53 }
0x1952   :  { %2216 = vtanh.f32 %v1729_v15 }
0x1953   :  { %2218 = vtanh.f32 %v1730_v17 }
0x1958   :  { %v2217_v18 = vpop.eup %2216 }
0x1959   :  { %v2219_v19 = vpop.eup %2218  ;;  %1733 = vst.msk [vmem:[#allocation3] sm:$0x8] %vm1385_vm12, %v2217_v18  ;;  %v1737_v20 = vrot.slane %v2217_v18, 3 }
0x195a   :  { %1734 = vst.msk [vmem:[#allocation3 + $0x8] sm:$0x8] %vm1385_vm12, %v2219_v19  ;;  %v1738_v16 = vrot.slane %v2219_v19, 2 }
0x195c   :  { %v1739_v21 = vsel %vm328_vm9, %v1738_v16, %v1737_v20 }
0x195d   :  { %2016 = vmatmul.msk.f32.vlgmr.msra.gmra.mxu3 %vm180_vm0, %v1739_v21 }
0x19e0   :  { %v1759_v22 = vpop.f32.mrf.mxu3 }
0x19e1   :  { %v1763_v23 = vrot.slane %v1759_v22, 4  ;;  %v1764_v24 = vrot.slane %v1759_v22, 5 }
0x19e3   :  { %v1767_v25 = vadd.f32 %v1763_v23, %v2950_v57  ;;  %v1768_v27 = vadd.f32 %v1764_v24, %v2953_v53 }
0x19e5   :  { %2220 = vtanh.f32 %v1767_v25 }
0x19e6   :  { %2222 = vtanh.f32 %v1768_v27 }
0x19eb   :  { %v2221_v28 = vpop.eup %2220 }
0x19ec   :  { %v2223_v29 = vpop.eup %2222  ;;  %1771 = vst.msk [vmem:[#allocation3] sm:$0x10] %vm1424_vm13, %v2221_v28  ;;  %v1775_v30 = vrot.slane %v2221_v28, 4 }
0x19ed   :  { %1772 = vst.msk [vmem:[#allocation3 + $0x8] sm:$0x10] %vm1424_vm13, %v2223_v29  ;;  %v1776_v31 = vrot.slane %v2223_v29, 3 }
0x19ef   :  { %v1777_v32 = vsel %vm328_vm9, %v1776_v31, %v1775_v30 }
0x19f0   :  { %2017 = vmatmul.msk.f32.vlgmr.msra.gmra.mxu0 %vm180_vm0, %v1777_v32 }
0x1a6d   :  { %v1797_v33 = vpop.f32.mrf.mxu0 }
0x1a6e   :  { %v1801_v34 = vrot.slane %v1797_v33, 3  ;;  %v1802_v35 = vrot.slane %v1797_v33, 4 }
0x1a70   :  { %v1805_v7 = vadd.f32 %v1801_v34, %v2950_v57  ;;  %v1806_v38 = vadd.f32 %v1802_v35, %v2953_v53 }
0x1a72   :  { %2224 = vtanh.f32 %v1805_v7 }
0x1a73   :  { %2226 = vtanh.f32 %v1806_v38 }
0x1a78   :  { %v2225_v39 = vpop.eup %2224 }
0x1a79   :  { %v2227_v40 = vpop.eup %2226  ;;  %v1813_v45 = vrot.slane %v2225_v39, 5  ;;  %1809 = vst.msk [vmem:[#allocation3] sm:$0x20] %vm1463_vm14, %v2225_v39 }
0x1a7a   :  { %v1814_v46 = vrot.slane %v2227_v40, 4  ;;  %1810 = vst.msk [vmem:[#allocation3 + $0x8] sm:$0x20] %vm1463_vm14, %v2227_v40 }
0x1a7c   :  { %v1815_v54 = vsel %vm328_vm9, %v1814_v46, %v1813_v45 }
0x1a7d   :  { %2018 = vmatmul.msk.f32.vlgmr.msra.gmra.mxu1 %vm180_vm0, %v1815_v54 }
0x1afa   :  { %v1835_v41 = vpop.f32.mrf.mxu1 }
0x1afb   :  { %v1839_v62 = vrot.slane %v1835_v41, 2  ;;  %v1840_v14 = vrot.slane %v1835_v41, 3 }
0x1afd   :  { %v1843_v26 = vadd.f32 %v1839_v62, %v2950_v57  ;;  %v1844_v43 = vadd.f32 %v1840_v14, %v2953_v53 }
0x1aff   :  { %2228 = vtanh.f32 %v1843_v26 }
0x1b00   :  { %2230 = vtanh.f32 %v1844_v43 }
0x1b05   :  { %v2229_v37 = vpop.eup %2228 }
0x1b06   :  { %v2231_v58 = vpop.eup %2230  ;;  %v1851_v61 = vrot.slane %v2229_v37, 6  ;;  %1847 = vst.msk [vmem:[#allocation3] sm:$0x40] %vm1502_vm15, %v2229_v37 }
0x1b07   :  { %v1852_v44 = vrot.slane %v2231_v58, 5  ;;  %1848 = vst.msk [vmem:[#allocation3 + $0x8] sm:$0x40] %vm1502_vm15, %v2231_v58 }
0x1b09   :  { %v1853_v42 = vsel %vm328_vm9, %v1852_v44, %v1851_v61 }
0x1b0a   :  { %2019 = vmatmul.msk.f32.vlgmr.msrb.gmra.mxu2 %vm180_vm0, %v1853_v42 }
0x1b8d   :  { %v1873_v5 = vpop.f32.mrf.mxu2 }
0x1b8e   :  { %v1877_v47 = vrot.slane %v1873_v5, 1  ;;  %v1878_v59 = vrot.slane %v1873_v5, 2 }
0x1b90   :  { %v1881_v36 = vadd.f32 %v1877_v47, %v2950_v57  ;;  %v1882_v55 = vadd.f32 %v1878_v59, %v2953_v53  ;;  %v2043_v57 = vld [vmem:[%s3031_s11] ss:$0 sm:$0xff] }
0x1b92   :  { %2232 = vtanh.f32 %v1881_v36 }
0x1b93   :  { %2234 = vtanh.f32 %v1882_v55 }
0x1b98   :  { %v2233_v50 = vpop.eup %2232 }
0x1b99   :  { %v2235_v52 = vpop.eup %2234  ;;  %1893 = vst.msk [vmem:[#allocation19 - $0x5] sm:$0x80] %vm1541_vm1, %v2233_v50 }
0x1b9a   :  { %v1889_v49 = vrot.slane %v2235_v52, 7  ;;  %1885 = vst.msk [vmem:[#allocation3] sm:$0x80] %vm1541_vm1, %v2233_v50 }
0x1b9b   :  { %1886 = vst.msk [vmem:[#allocation3 + $0x8] sm:$0x80] %vm1541_vm1, %v2235_v52 }
0x1b9c   :  { %1894 = vst.msk [vmem:[#allocation19 + $0x3] sm:$0x1] %vm1271_vm8, %v1889_v49 }
0x1b9d   :  { %1961 = dma.vmem_to_hbm [thread:$0]  %s1954_s14, 64, %s1956_s19, [#allocation20], %s2503_s27, %s2503_s27, %s2506_s3  }
0x1ba1   :  { %v1895_v48 = vld [vmem:[#allocation3] sm:$0xff] }
0x1ba2   :  { %2020 = vmatmul.msk.f32.vlgmr.msrb.gmra.mxu3 %vm180_vm0, %v1895_v48  ;;  %v1896_v51 = vld [vmem:[#allocation3 + $0x8] sm:$0xff] }
0x1baa   :  { %2021 = vmatmul.msk.f32.gmra.mxu3 %vm180_vm0, %v1896_v51 }
0x1c25   :  { %v1928_v53 = vpop.f32.mrf.mxu3 }
0x1c26   :  { %v1929_v1 = vadd.f32 %v2043_v57, %v1928_v53 }
0x1c28   :  { %1934 = vst.msk [vmem:[#allocation18] sm:$0xff] %vm180_vm0, %v1929_v1 }
0x1c2d   :  { %v1931_v6 = vpop.f32.mrf.mxu3 }
0x1c2e   :  { %v1932_v8 = vadd.f32 %v2043_v57, %v1931_v6 }
0x1c30   :  { %1935 = vst.msk [vmem:[#allocation18 + $0x8] sm:$0xff] %vm180_vm0, %v1932_v8 }
0x1c31   :  { %1948 = dma.vmem_to_hbm [thread:$0]  %s1941_s5, 256, %s1943_s13, [#allocation6], %s2491_s16, %s2491_s16, %s2492_s17  }
0x1c32   :  { %2486 = dma.done.wait [#allocation6], 256  }
0x1c33   :  { %2487 = vsyncadd [#allocation6], 4294967040 }
0x1c34   :  { %2488 = dma.done.wait [#allocation20], 64  }
0x1c35   :  { %2489 = vsyncadd [#allocation20], 4294967232 }
0x1c36   :  { %1970 = vsyncpa [#allocation5], 1 }
0x1c37   :  { %1971 = vsyncpa [#allocation8], 1 }
0x1c38   :  { %1972 = vsyncpa [#allocation11], 1 }
0x1c39   :  { %1973 = vsyncpa [#allocation14], 1 }
0x1c3a   :  { %1974 = vsyncpa [#allocation17], 1 }
0x1c3b   :  { %1975 = vsyncpa [#allocation6], 1 }
0x1c3c   :  { %1976 = vsyncpa [#allocation20], 1 }

</bundles_post_ra>
